<compile_context>
chip_gen: v7x
topology: tpu7x:2x2x1
jax: 0.10.0
libtpu: 0.0.40
codegen_flags: <defaults>
</compile_context>

<pallas_src>
import jax
import jax.numpy as jnp
import numpy as np
from jax import lax
from jax.experimental import pallas as pl
from jax.experimental.pallas import tpu as pltpu  # noqa: F401  (TPU backend)


# ------------------------------ fused kernel --------------------------------

def _make_fused_tcn_kernel(block_meta, B, T, L):
    """Builds one fused kernel for the whole TCN stack + final FC.

    block_meta: tuple of dicts {"dilation": int, "has_down": bool}.
    Activations live as (C, L) VMEM tiles: channels on sublanes, batch*time
    folded onto lanes (lane index = b*T + t, zero-padded up to L lanes).
    """

    def kernel(*refs):
        x_ref = refs[0]
        out_ref = refs[-1]
        wrefs = refs[1:-1]

        idx = 0

        def nxt():
            nonlocal idx
            r = wrefs[idx][...]
            idx += 1
            return r

        h = x_ref[...]                                    # (C0, L) f32

        # Per-dilation causal shift-and-mask matrix:
        #   S_d[i, j] = 1  iff  i == j - d  and  (j mod T) >= d
        # so (h @ S_d)[:, j] = h[:, j - d] inside a batch segment, else 0 —
        # exactly the left-zero-padded (chomped) tap-0 input of the conv.
        src = lax.broadcasted_iota(jnp.int32, (L, L), 0)
        dst = lax.broadcasted_iota(jnp.int32, (L, L), 1)

        def shift_mat(d):
            ok = (src == dst - d) & ((dst % T) >= d)
            return jnp.where(ok, 1.0, 0.0)

        for meta in block_meta:
            d = meta["dilation"]
            S = shift_mat(d)

            w1a, w1b, b1 = nxt(), nxt(), nxt()
            w2a, w2b, b2 = nxt(), nxt(), nxt()

            # conv1 (causal, k=2) + chomp + ReLU
            # TODO(synk): nn.Dropout is stochastic in train mode; implemented
            # as eval-mode identity here.
            hs = jnp.dot(h, S, preferred_element_type=jnp.float32)
            h1 = jnp.dot(w1a, hs, preferred_element_type=jnp.float32)
            h1 = h1 + jnp.dot(w1b, h, preferred_element_type=jnp.float32) + b1
            h1 = jnp.maximum(h1, 0.0)

            # conv2 (causal, k=2) + chomp + ReLU
            h1s = jnp.dot(h1, S, preferred_element_type=jnp.float32)
            o = jnp.dot(w2a, h1s, preferred_element_type=jnp.float32)
            o = o + jnp.dot(w2b, h1, preferred_element_type=jnp.float32) + b2
            o = jnp.maximum(o, 0.0)

            # residual (identity, or 1x1 downsample conv) + final ReLU
            if meta["has_down"]:
                wd, bd = nxt(), nxt()
                res = jnp.dot(wd, h, preferred_element_type=jnp.float32) + bd
            else:
                res = h
            h = jnp.maximum(o + res, 0.0)

        # Fused FC head: pick lane b*T + (T-1) for each batch element with an
        # iota-built one-hot selector, then (1, C_last) @ (C_last, B) + bias.
        fc_w, fc_b = nxt(), nxt()
        row = lax.broadcasted_iota(jnp.int32, (L, B), 0)
        col = lax.broadcasted_iota(jnp.int32, (L, B), 1)
        sel = jnp.where(row == col * T + (T - 1), 1.0, 0.0)        # (L, B)
        y = jnp.dot(h, sel, preferred_element_type=jnp.float32)    # (C_last, B)
        out_ref[...] = (jnp.dot(fc_w, y, preferred_element_type=jnp.float32)
                        + fc_b)                                    # (1, B)

    return kernel


# ------------------------------ JAX wrapper ----------------------------------

def tcn_forward(x, params):
    """x: (B, T, num_inputs) — same input convention as the PyTorch module."""
    B, T, C0 = x.shape
    L = max(128, ((B * T + 127) // 128) * 128)     # lane-dense (multiple of 128)

    # (B, T, C) -> (C, B*T), lane index = b*T + t, zero-pad lanes to L.
    xt = jnp.transpose(x, (2, 0, 1)).reshape(C0, B * T)
    xt = jnp.pad(xt, ((0, 0), (0, L - B * T)))

    block_meta = []
    flat_args = [xt]
    for i, blk in enumerate(params["blocks"]):
        block_meta.append({"dilation": 2 ** i, "has_down": "down_w" in blk})
        flat_args += [blk["conv1_w"][:, :, 0], blk["conv1_w"][:, :, 1],
                      blk["conv1_b"][:, None],
                      blk["conv2_w"][:, :, 0], blk["conv2_w"][:, :, 1],
                      blk["conv2_b"][:, None]]
        if "down_w" in blk:
            flat_args += [blk["down_w"][:, :, 0], blk["down_b"][:, None]]
    flat_args += [params["fc_w"], params["fc_b"].reshape(1, 1)]

    kernel = _make_fused_tcn_kernel(tuple(block_meta), B, T, L)
    # Single invocation (no grid): every operand is DMA'd to VMEM exactly once
    # and stays resident; only the tiny (1, B) result is written back to HBM.
    out = pl.pallas_call(
        kernel,
        out_shape=jax.ShapeDtypeStruct((1, B), jnp.float32),
    )(*flat_args)
    return out.reshape(B, 1)


# ------------------------- deterministic parameters --------------------------

def init_params(key, num_inputs, num_channels, kernel_size=2):
    params = {"blocks": []}
    in_c = num_inputs
    for out_c in num_channels:
        key, k1, k2, k3, k4, k5, k6 = jax.random.split(key, 7)
        blk = {
            "conv1_w": jax.random.normal(k1, (out_c, in_c, kernel_size), jnp.float32) * 0.3,
            "conv1_b": jax.random.normal(k2, (out_c,), jnp.float32) * 0.1,
            "conv2_w": jax.random.normal(k3, (out_c, out_c, kernel_size), jnp.float32) * 0.3,
            "conv2_b": jax.random.normal(k4, (out_c,), jnp.float32) * 0.1,
        }
        if in_c != out_c:
            blk["down_w"] = jax.random.normal(k5, (out_c, in_c, 1), jnp.float32) * 0.3
            blk["down_b"] = jax.random.normal(k6, (out_c,), jnp.float32) * 0.1
        params["blocks"].append(blk)
        in_c = out_c
    key, kf1, kf2 = jax.random.split(key, 3)
    params["fc_w"] = jax.random.normal(kf1, (1, in_c), jnp.float32) * 0.3
    params["fc_b"] = jax.random.normal(kf2, (1,), jnp.float32) * 0.1
    return params


# ----------------------- pure-JAX reference (for check) ----------------------

def _ref_causal_conv(x, w, b, dilation):
    T = x.shape[-1]
    k = w.shape[-1]
    pad = dilation * (k - 1)
    y = lax.conv_general_dilated(
        x, w, window_strides=(1,), padding=[(pad, pad)],
        rhs_dilation=(dilation,), dimension_numbers=("NCH", "OIH", "NCH"),
        precision=lax.Precision.HIGHEST)
    y = y[:, :, :T]                           # Chomp1d
    return y + b[None, :, None]


def ref_forward(x, params):
    h = jnp.transpose(x, (0, 2, 1))
    for i, blk in enumerate(params["blocks"]):
        d = 2 ** i
        out = jax.nn.relu(_ref_causal_conv(h, blk["conv1_w"], blk["conv1_b"], d))
        out = jax.nn.relu(_ref_causal_conv(out, blk["conv2_w"], blk["conv2_b"], d))
        if "down_w" in blk:
            res = _ref_causal_conv(h, blk["down_w"], blk["down_b"], 1)
        else:
            res = h
        h = jax.nn.relu(out + res)
    y = h[:, :, -1]
    return y @ params["fc_w"].T + params["fc_b"][None, :]


# ----------------------------------- main -------------------------------------

if __name__ == "__main__":
    key = jax.random.PRNGKey(0)
    num_inputs = 4
    num_channels = (8, 8, 16)     # exercises both identity and 1x1-downsample residuals
    B, T = 2, 16

    kp, kx = jax.random.split(key)
    params = init_params(kp, num_inputs, num_channels, kernel_size=2)
    x = jax.random.normal(kx, (B, T, num_inputs), jnp.float32)

    out = jax.block_until_ready(tcn_forward(x, params))

    ref = ref_forward(x, params)
    np.testing.assert_allclose(np.asarray(out), np.asarray(ref),
                               rtol=5e-3, atol=5e-3)
    assert out.shape == (B, 1)
    print("KERNEL_OK")
</pallas_src>

<mosaic_0001>
module attributes {stable_mosaic.version = 11 : i64} {
  func.func @kernel(%arg0: memref<4x128xf32, #tpu.memory_space<vmem>>, %arg1: memref<8x4xf32, #tpu.memory_space<vmem>>, %arg2: memref<8x4xf32, #tpu.memory_space<vmem>>, %arg3: memref<8x1xf32, #tpu.memory_space<vmem>>, %arg4: memref<8x8xf32, #tpu.memory_space<vmem>>, %arg5: memref<8x8xf32, #tpu.memory_space<vmem>>, %arg6: memref<8x1xf32, #tpu.memory_space<vmem>>, %arg7: memref<8x4xf32, #tpu.memory_space<vmem>>, %arg8: memref<8x1xf32, #tpu.memory_space<vmem>>, %arg9: memref<8x8xf32, #tpu.memory_space<vmem>>, %arg10: memref<8x8xf32, #tpu.memory_space<vmem>>, %arg11: memref<8x1xf32, #tpu.memory_space<vmem>>, %arg12: memref<8x8xf32, #tpu.memory_space<vmem>>, %arg13: memref<8x8xf32, #tpu.memory_space<vmem>>, %arg14: memref<8x1xf32, #tpu.memory_space<vmem>>, %arg15: memref<16x8xf32, #tpu.memory_space<vmem>>, %arg16: memref<16x8xf32, #tpu.memory_space<vmem>>, %arg17: memref<16x1xf32, #tpu.memory_space<vmem>>, %arg18: memref<16x16xf32, #tpu.memory_space<vmem>>, %arg19: memref<16x16xf32, #tpu.memory_space<vmem>>, %arg20: memref<16x1xf32, #tpu.memory_space<vmem>>, %arg21: memref<16x8xf32, #tpu.memory_space<vmem>>, %arg22: memref<16x1xf32, #tpu.memory_space<vmem>>, %arg23: memref<1x16xf32, #tpu.memory_space<vmem>>, %arg24: memref<1x1xf32, #tpu.memory_space<vmem>>, %arg25: memref<1x2xf32, #tpu.memory_space<vmem>>) attributes {dimension_semantics = [], scalar_prefetch = 0 : i64, scratch_operands = 0 : i64, tpu.core_type = #tpu.core_type<tc>} {
    %c0 = arith.constant 0 : index
    %c0_0 = arith.constant 0 : index
    %0 = vector.load %arg0[%c0, %c0_0] : memref<4x128xf32, #tpu.memory_space<vmem>>, vector<4x128xf32>
    %1 = tpu.iota {dimensions = array<i32: 0>} : vector<128x128xi32>
    %2 = tpu.iota {dimensions = array<i32: 1>} : vector<128x128xi32>
    %c1_i32 = arith.constant 1 : i32
    %3 = vector.broadcast %c1_i32 : i32 to vector<128x128xi32>
    %4 = arith.subi %2, %3 : vector<128x128xi32>
    %5 = arith.cmpi eq, %1, %4 : vector<128x128xi32>
    %c16_i32 = arith.constant 16 : i32
    %c0_i32 = arith.constant 0 : i32
    %6 = arith.cmpi eq, %c16_i32, %c0_i32 : i32
    %c1_i32_1 = arith.constant 1 : i32
    %7 = arith.select %6, %c1_i32_1, %c16_i32 : i32
    %8 = vector.broadcast %7 : i32 to vector<128x128xi32>
    %9 = arith.remsi %2, %8 : vector<128x128xi32>
    %c0_i32_2 = arith.constant 0 : i32
    %10 = vector.broadcast %c0_i32_2 : i32 to vector<128x128xi32>
    %11 = arith.cmpi ne, %9, %10 : vector<128x128xi32>
    %c0_i32_3 = arith.constant 0 : i32
    %12 = vector.broadcast %c0_i32_3 : i32 to vector<128x128xi32>
    %13 = arith.cmpi slt, %9, %12 : vector<128x128xi32>
    %c0_i32_4 = arith.constant 0 : i32
    %14 = arith.cmpi slt, %7, %c0_i32_4 : i32
    %15 = vector.broadcast %14 : i1 to vector<128x128xi1>
    %16 = vector.broadcast %15 : vector<128x128xi1> to vector<128x128xi1>
    %17 = arith.xori %13, %16 : vector<128x128xi1>
    %18 = arith.andi %17, %11 : vector<128x128xi1>
    %19 = vector.broadcast %7 : i32 to vector<128x128xi32>
    %20 = arith.addi %9, %19 : vector<128x128xi32>
    %21 = arith.select %18, %20, %9 : vector<128x128xi1>, vector<128x128xi32>
    %c1_i32_5 = arith.constant 1 : i32
    %22 = vector.broadcast %c1_i32_5 : i32 to vector<128x128xi32>
    %23 = arith.cmpi sge, %21, %22 : vector<128x128xi32>
    %24 = arith.andi %5, %23 : vector<128x128xi1>
    %cst = arith.constant 1.000000e+00 : f32
    %cst_6 = arith.constant 0.000000e+00 : f32
    %25 = vector.broadcast %cst : f32 to vector<128x128xf32>
    %26 = vector.broadcast %cst_6 : f32 to vector<128x128xf32>
    %27 = arith.select %24, %25, %26 : vector<128x128xi1>, vector<128x128xf32>
    %c0_7 = arith.constant 0 : index
    %c0_8 = arith.constant 0 : index
    %28 = vector.load %arg1[%c0_7, %c0_8] : memref<8x4xf32, #tpu.memory_space<vmem>>, vector<8x4xf32>
    %c0_9 = arith.constant 0 : index
    %c0_10 = arith.constant 0 : index
    %29 = vector.load %arg2[%c0_9, %c0_10] : memref<8x4xf32, #tpu.memory_space<vmem>>, vector<8x4xf32>
    %c0_11 = arith.constant 0 : index
    %c0_12 = arith.constant 0 : index
    %30 = vector.load %arg3[%c0_11, %c0_12] : memref<8x1xf32, #tpu.memory_space<vmem>>, vector<8x1xf32>
    %c0_13 = arith.constant 0 : index
    %c0_14 = arith.constant 0 : index
    %31 = vector.load %arg4[%c0_13, %c0_14] : memref<8x8xf32, #tpu.memory_space<vmem>>, vector<8x8xf32>
    %c0_15 = arith.constant 0 : index
    %c0_16 = arith.constant 0 : index
    %32 = vector.load %arg5[%c0_15, %c0_16] : memref<8x8xf32, #tpu.memory_space<vmem>>, vector<8x8xf32>
    %c0_17 = arith.constant 0 : index
    %c0_18 = arith.constant 0 : index
    %33 = vector.load %arg6[%c0_17, %c0_18] : memref<8x1xf32, #tpu.memory_space<vmem>>, vector<8x1xf32>
    %cst_19 = arith.constant dense<0.000000e+00> : vector<4x128xf32>
    %34 = tpu.matmul %0, %27, %cst_19 {dimension_numbers = #tpu.dot_dimension_numbers<[1], [0], [0], [1], [0, 0, 1, 1], [], []>} : vector<4x128xf32>, vector<128x128xf32>, vector<4x128xf32> -> vector<4x128xf32>
    %cst_20 = arith.constant dense<0.000000e+00> : vector<8x128xf32>
    %35 = tpu.matmul %28, %34, %cst_20 {dimension_numbers = #tpu.dot_dimension_numbers<[1], [0], [0], [1], [0, 0, 1, 1], [], []>} : vector<8x4xf32>, vector<4x128xf32>, vector<8x128xf32> -> vector<8x128xf32>
    %cst_21 = arith.constant dense<0.000000e+00> : vector<8x128xf32>
    %36 = tpu.matmul %29, %0, %cst_21 {dimension_numbers = #tpu.dot_dimension_numbers<[1], [0], [0], [1], [0, 0, 1, 1], [], []>} : vector<8x4xf32>, vector<4x128xf32>, vector<8x128xf32> -> vector<8x128xf32>
    %37 = arith.addf %35, %36 : vector<8x128xf32>
    %38 = vector.broadcast %30 : vector<8x1xf32> to vector<8x128xf32>
    %39 = arith.addf %37, %38 : vector<8x128xf32>
    %cst_22 = arith.constant 0.000000e+00 : f32
    %40 = vector.broadcast %cst_22 : f32 to vector<8x128xf32>
    %41 = arith.maximumf %39, %40 : vector<8x128xf32>
    %cst_23 = arith.constant dense<0.000000e+00> : vector<8x128xf32>
    %42 = tpu.matmul %41, %27, %cst_23 {dimension_numbers = #tpu.dot_dimension_numbers<[1], [0], [0], [1], [0, 0, 1, 1], [], []>} : vector<8x128xf32>, vector<128x128xf32>, vector<8x128xf32> -> vector<8x128xf32>
    %cst_24 = arith.constant dense<0.000000e+00> : vector<8x128xf32>
    %43 = tpu.matmul %31, %42, %cst_24 {dimension_numbers = #tpu.dot_dimension_numbers<[1], [0], [0], [1], [0, 0, 1, 1], [], []>} : vector<8x8xf32>, vector<8x128xf32>, vector<8x128xf32> -> vector<8x128xf32>
    %cst_25 = arith.constant dense<0.000000e+00> : vector<8x128xf32>
    %44 = tpu.matmul %32, %41, %cst_25 {dimension_numbers = #tpu.dot_dimension_numbers<[1], [0], [0], [1], [0, 0, 1, 1], [], []>} : vector<8x8xf32>, vector<8x128xf32>, vector<8x128xf32> -> vector<8x128xf32>
    %45 = arith.addf %43, %44 : vector<8x128xf32>
    %46 = vector.broadcast %33 : vector<8x1xf32> to vector<8x128xf32>
    %47 = arith.addf %45, %46 : vector<8x128xf32>
    %cst_26 = arith.constant 0.000000e+00 : f32
    %48 = vector.broadcast %cst_26 : f32 to vector<8x128xf32>
    %49 = arith.maximumf %47, %48 : vector<8x128xf32>
    %c0_27 = arith.constant 0 : index
    %c0_28 = arith.constant 0 : index
    %50 = vector.load %arg7[%c0_27, %c0_28] : memref<8x4xf32, #tpu.memory_space<vmem>>, vector<8x4xf32>
    %c0_29 = arith.constant 0 : index
    %c0_30 = arith.constant 0 : index
    %51 = vector.load %arg8[%c0_29, %c0_30] : memref<8x1xf32, #tpu.memory_space<vmem>>, vector<8x1xf32>
    %cst_31 = arith.constant dense<0.000000e+00> : vector<8x128xf32>
    %52 = tpu.matmul %50, %0, %cst_31 {dimension_numbers = #tpu.dot_dimension_numbers<[1], [0], [0], [1], [0, 0, 1, 1], [], []>} : vector<8x4xf32>, vector<4x128xf32>, vector<8x128xf32> -> vector<8x128xf32>
    %53 = vector.broadcast %51 : vector<8x1xf32> to vector<8x128xf32>
    %54 = arith.addf %52, %53 : vector<8x128xf32>
    %55 = arith.addf %49, %54 : vector<8x128xf32>
    %cst_32 = arith.constant 0.000000e+00 : f32
    %56 = vector.broadcast %cst_32 : f32 to vector<8x128xf32>
    %57 = arith.maximumf %55, %56 : vector<8x128xf32>
    %c2_i32 = arith.constant 2 : i32
    %58 = vector.broadcast %c2_i32 : i32 to vector<128x128xi32>
    %59 = arith.subi %2, %58 : vector<128x128xi32>
    %60 = arith.cmpi eq, %1, %59 : vector<128x128xi32>
    %c16_i32_33 = arith.constant 16 : i32
    %c0_i32_34 = arith.constant 0 : i32
    %61 = arith.cmpi eq, %c16_i32_33, %c0_i32_34 : i32
    %c1_i32_35 = arith.constant 1 : i32
    %62 = arith.select %61, %c1_i32_35, %c16_i32_33 : i32
    %63 = vector.broadcast %62 : i32 to vector<128x128xi32>
    %64 = arith.remsi %2, %63 : vector<128x128xi32>
    %c0_i32_36 = arith.constant 0 : i32
    %65 = vector.broadcast %c0_i32_36 : i32 to vector<128x128xi32>
    %66 = arith.cmpi ne, %64, %65 : vector<128x128xi32>
    %c0_i32_37 = arith.constant 0 : i32
    %67 = vector.broadcast %c0_i32_37 : i32 to vector<128x128xi32>
    %68 = arith.cmpi slt, %64, %67 : vector<128x128xi32>
    %c0_i32_38 = arith.constant 0 : i32
    %69 = arith.cmpi slt, %62, %c0_i32_38 : i32
    %70 = vector.broadcast %69 : i1 to vector<128x128xi1>
    %71 = vector.broadcast %70 : vector<128x128xi1> to vector<128x128xi1>
    %72 = arith.xori %68, %71 : vector<128x128xi1>
    %73 = arith.andi %72, %66 : vector<128x128xi1>
    %74 = vector.broadcast %62 : i32 to vector<128x128xi32>
    %75 = arith.addi %64, %74 : vector<128x128xi32>
    %76 = arith.select %73, %75, %64 : vector<128x128xi1>, vector<128x128xi32>
    %c2_i32_39 = arith.constant 2 : i32
    %77 = vector.broadcast %c2_i32_39 : i32 to vector<128x128xi32>
    %78 = arith.cmpi sge, %76, %77 : vector<128x128xi32>
    %79 = arith.andi %60, %78 : vector<128x128xi1>
    %cst_40 = arith.constant 1.000000e+00 : f32
    %cst_41 = arith.constant 0.000000e+00 : f32
    %80 = vector.broadcast %cst_40 : f32 to vector<128x128xf32>
    %81 = vector.broadcast %cst_41 : f32 to vector<128x128xf32>
    %82 = arith.select %79, %80, %81 : vector<128x128xi1>, vector<128x128xf32>
    %c0_42 = arith.constant 0 : index
    %c0_43 = arith.constant 0 : index
    %83 = vector.load %arg9[%c0_42, %c0_43] : memref<8x8xf32, #tpu.memory_space<vmem>>, vector<8x8xf32>
    %c0_44 = arith.constant 0 : index
    %c0_45 = arith.constant 0 : index
    %84 = vector.load %arg10[%c0_44, %c0_45] : memref<8x8xf32, #tpu.memory_space<vmem>>, vector<8x8xf32>
    %c0_46 = arith.constant 0 : index
    %c0_47 = arith.constant 0 : index
    %85 = vector.load %arg11[%c0_46, %c0_47] : memref<8x1xf32, #tpu.memory_space<vmem>>, vector<8x1xf32>
    %c0_48 = arith.constant 0 : index
    %c0_49 = arith.constant 0 : index
    %86 = vector.load %arg12[%c0_48, %c0_49] : memref<8x8xf32, #tpu.memory_space<vmem>>, vector<8x8xf32>
    %c0_50 = arith.constant 0 : index
    %c0_51 = arith.constant 0 : index
    %87 = vector.load %arg13[%c0_50, %c0_51] : memref<8x8xf32, #tpu.memory_space<vmem>>, vector<8x8xf32>
    %c0_52 = arith.constant 0 : index
    %c0_53 = arith.constant 0 : index
    %88 = vector.load %arg14[%c0_52, %c0_53] : memref<8x1xf32, #tpu.memory_space<vmem>>, vector<8x1xf32>
    %cst_54 = arith.constant dense<0.000000e+00> : vector<8x128xf32>
    %89 = tpu.matmul %57, %82, %cst_54 {dimension_numbers = #tpu.dot_dimension_numbers<[1], [0], [0], [1], [0, 0, 1, 1], [], []>} : vector<8x128xf32>, vector<128x128xf32>, vector<8x128xf32> -> vector<8x128xf32>
    %cst_55 = arith.constant dense<0.000000e+00> : vector<8x128xf32>
    %90 = tpu.matmul %83, %89, %cst_55 {dimension_numbers = #tpu.dot_dimension_numbers<[1], [0], [0], [1], [0, 0, 1, 1], [], []>} : vector<8x8xf32>, vector<8x128xf32>, vector<8x128xf32> -> vector<8x128xf32>
    %cst_56 = arith.constant dense<0.000000e+00> : vector<8x128xf32>
    %91 = tpu.matmul %84, %57, %cst_56 {dimension_numbers = #tpu.dot_dimension_numbers<[1], [0], [0], [1], [0, 0, 1, 1], [], []>} : vector<8x8xf32>, vector<8x128xf32>, vector<8x128xf32> -> vector<8x128xf32>
    %92 = arith.addf %90, %91 : vector<8x128xf32>
    %93 = vector.broadcast %85 : vector<8x1xf32> to vector<8x128xf32>
    %94 = arith.addf %92, %93 : vector<8x128xf32>
    %cst_57 = arith.constant 0.000000e+00 : f32
    %95 = vector.broadcast %cst_57 : f32 to vector<8x128xf32>
    %96 = arith.maximumf %94, %95 : vector<8x128xf32>
    %cst_58 = arith.constant dense<0.000000e+00> : vector<8x128xf32>
    %97 = tpu.matmul %96, %82, %cst_58 {dimension_numbers = #tpu.dot_dimension_numbers<[1], [0], [0], [1], [0, 0, 1, 1], [], []>} : vector<8x128xf32>, vector<128x128xf32>, vector<8x128xf32> -> vector<8x128xf32>
    %cst_59 = arith.constant dense<0.000000e+00> : vector<8x128xf32>
    %98 = tpu.matmul %86, %97, %cst_59 {dimension_numbers = #tpu.dot_dimension_numbers<[1], [0], [0], [1], [0, 0, 1, 1], [], []>} : vector<8x8xf32>, vector<8x128xf32>, vector<8x128xf32> -> vector<8x128xf32>
    %cst_60 = arith.constant dense<0.000000e+00> : vector<8x128xf32>
    %99 = tpu.matmul %87, %96, %cst_60 {dimension_numbers = #tpu.dot_dimension_numbers<[1], [0], [0], [1], [0, 0, 1, 1], [], []>} : vector<8x8xf32>, vector<8x128xf32>, vector<8x128xf32> -> vector<8x128xf32>
    %100 = arith.addf %98, %99 : vector<8x128xf32>
    %101 = vector.broadcast %88 : vector<8x1xf32> to vector<8x128xf32>
    %102 = arith.addf %100, %101 : vector<8x128xf32>
    %cst_61 = arith.constant 0.000000e+00 : f32
    %103 = vector.broadcast %cst_61 : f32 to vector<8x128xf32>
    %104 = arith.maximumf %102, %103 : vector<8x128xf32>
    %105 = arith.addf %104, %57 : vector<8x128xf32>
    %cst_62 = arith.constant 0.000000e+00 : f32
    %106 = vector.broadcast %cst_62 : f32 to vector<8x128xf32>
    %107 = arith.maximumf %105, %106 : vector<8x128xf32>
    %c4_i32 = arith.constant 4 : i32
    %108 = vector.broadcast %c4_i32 : i32 to vector<128x128xi32>
    %109 = arith.subi %2, %108 : vector<128x128xi32>
    %110 = arith.cmpi eq, %1, %109 : vector<128x128xi32>
    %c16_i32_63 = arith.constant 16 : i32
    %c0_i32_64 = arith.constant 0 : i32
    %111 = arith.cmpi eq, %c16_i32_63, %c0_i32_64 : i32
    %c1_i32_65 = arith.constant 1 : i32
    %112 = arith.select %111, %c1_i32_65, %c16_i32_63 : i32
    %113 = vector.broadcast %112 : i32 to vector<128x128xi32>
    %114 = arith.remsi %2, %113 : vector<128x128xi32>
    %c0_i32_66 = arith.constant 0 : i32
    %115 = vector.broadcast %c0_i32_66 : i32 to vector<128x128xi32>
    %116 = arith.cmpi ne, %114, %115 : vector<128x128xi32>
    %c0_i32_67 = arith.constant 0 : i32
    %117 = vector.broadcast %c0_i32_67 : i32 to vector<128x128xi32>
    %118 = arith.cmpi slt, %114, %117 : vector<128x128xi32>
    %c0_i32_68 = arith.constant 0 : i32
    %119 = arith.cmpi slt, %112, %c0_i32_68 : i32
    %120 = vector.broadcast %119 : i1 to vector<128x128xi1>
    %121 = vector.broadcast %120 : vector<128x128xi1> to vector<128x128xi1>
    %122 = arith.xori %118, %121 : vector<128x128xi1>
    %123 = arith.andi %122, %116 : vector<128x128xi1>
    %124 = vector.broadcast %112 : i32 to vector<128x128xi32>
    %125 = arith.addi %114, %124 : vector<128x128xi32>
    %126 = arith.select %123, %125, %114 : vector<128x128xi1>, vector<128x128xi32>
    %c4_i32_69 = arith.constant 4 : i32
    %127 = vector.broadcast %c4_i32_69 : i32 to vector<128x128xi32>
    %128 = arith.cmpi sge, %126, %127 : vector<128x128xi32>
    %129 = arith.andi %110, %128 : vector<128x128xi1>
    %cst_70 = arith.constant 1.000000e+00 : f32
    %cst_71 = arith.constant 0.000000e+00 : f32
    %130 = vector.broadcast %cst_70 : f32 to vector<128x128xf32>
    %131 = vector.broadcast %cst_71 : f32 to vector<128x128xf32>
    %132 = arith.select %129, %130, %131 : vector<128x128xi1>, vector<128x128xf32>
    %c0_72 = arith.constant 0 : index
    %c0_73 = arith.constant 0 : index
    %133 = vector.load %arg15[%c0_72, %c0_73] : memref<16x8xf32, #tpu.memory_space<vmem>>, vector<16x8xf32>
    %c0_74 = arith.constant 0 : index
    %c0_75 = arith.constant 0 : index
    %134 = vector.load %arg16[%c0_74, %c0_75] : memref<16x8xf32, #tpu.memory_space<vmem>>, vector<16x8xf32>
    %c0_76 = arith.constant 0 : index
    %c0_77 = arith.constant 0 : index
    %135 = vector.load %arg17[%c0_76, %c0_77] : memref<16x1xf32, #tpu.memory_space<vmem>>, vector<16x1xf32>
    %c0_78 = arith.constant 0 : index
    %c0_79 = arith.constant 0 : index
    %136 = vector.load %arg18[%c0_78, %c0_79] : memref<16x16xf32, #tpu.memory_space<vmem>>, vector<16x16xf32>
    %c0_80 = arith.constant 0 : index
    %c0_81 = arith.constant 0 : index
    %137 = vector.load %arg19[%c0_80, %c0_81] : memref<16x16xf32, #tpu.memory_space<vmem>>, vector<16x16xf32>
    %c0_82 = arith.constant 0 : index
    %c0_83 = arith.constant 0 : index
    %138 = vector.load %arg20[%c0_82, %c0_83] : memref<16x1xf32, #tpu.memory_space<vmem>>, vector<16x1xf32>
    %cst_84 = arith.constant dense<0.000000e+00> : vector<8x128xf32>
    %139 = tpu.matmul %107, %132, %cst_84 {dimension_numbers = #tpu.dot_dimension_numbers<[1], [0], [0], [1], [0, 0, 1, 1], [], []>} : vector<8x128xf32>, vector<128x128xf32>, vector<8x128xf32> -> vector<8x128xf32>
    %cst_85 = arith.constant dense<0.000000e+00> : vector<16x128xf32>
    %140 = tpu.matmul %133, %139, %cst_85 {dimension_numbers = #tpu.dot_dimension_numbers<[1], [0], [0], [1], [0, 0, 1, 1], [], []>} : vector<16x8xf32>, vector<8x128xf32>, vector<16x128xf32> -> vector<16x128xf32>
    %cst_86 = arith.constant dense<0.000000e+00> : vector<16x128xf32>
    %141 = tpu.matmul %134, %107, %cst_86 {dimension_numbers = #tpu.dot_dimension_numbers<[1], [0], [0], [1], [0, 0, 1, 1], [], []>} : vector<16x8xf32>, vector<8x128xf32>, vector<16x128xf32> -> vector<16x128xf32>
    %142 = arith.addf %140, %141 : vector<16x128xf32>
    %143 = vector.broadcast %135 : vector<16x1xf32> to vector<16x128xf32>
    %144 = arith.addf %142, %143 : vector<16x128xf32>
    %cst_87 = arith.constant 0.000000e+00 : f32
    %145 = vector.broadcast %cst_87 : f32 to vector<16x128xf32>
    %146 = arith.maximumf %144, %145 : vector<16x128xf32>
    %cst_88 = arith.constant dense<0.000000e+00> : vector<16x128xf32>
    %147 = tpu.matmul %146, %132, %cst_88 {dimension_numbers = #tpu.dot_dimension_numbers<[1], [0], [0], [1], [0, 0, 1, 1], [], []>} : vector<16x128xf32>, vector<128x128xf32>, vector<16x128xf32> -> vector<16x128xf32>
    %cst_89 = arith.constant dense<0.000000e+00> : vector<16x128xf32>
    %148 = tpu.matmul %136, %147, %cst_89 {dimension_numbers = #tpu.dot_dimension_numbers<[1], [0], [0], [1], [0, 0, 1, 1], [], []>} : vector<16x16xf32>, vector<16x128xf32>, vector<16x128xf32> -> vector<16x128xf32>
    %cst_90 = arith.constant dense<0.000000e+00> : vector<16x128xf32>
    %149 = tpu.matmul %137, %146, %cst_90 {dimension_numbers = #tpu.dot_dimension_numbers<[1], [0], [0], [1], [0, 0, 1, 1], [], []>} : vector<16x16xf32>, vector<16x128xf32>, vector<16x128xf32> -> vector<16x128xf32>
    %150 = arith.addf %148, %149 : vector<16x128xf32>
    %151 = vector.broadcast %138 : vector<16x1xf32> to vector<16x128xf32>
    %152 = arith.addf %150, %151 : vector<16x128xf32>
    %cst_91 = arith.constant 0.000000e+00 : f32
    %153 = vector.broadcast %cst_91 : f32 to vector<16x128xf32>
    %154 = arith.maximumf %152, %153 : vector<16x128xf32>
    %c0_92 = arith.constant 0 : index
    %c0_93 = arith.constant 0 : index
    %155 = vector.load %arg21[%c0_92, %c0_93] : memref<16x8xf32, #tpu.memory_space<vmem>>, vector<16x8xf32>
    %c0_94 = arith.constant 0 : index
    %c0_95 = arith.constant 0 : index
    %156 = vector.load %arg22[%c0_94, %c0_95] : memref<16x1xf32, #tpu.memory_space<vmem>>, vector<16x1xf32>
    %cst_96 = arith.constant dense<0.000000e+00> : vector<16x128xf32>
    %157 = tpu.matmul %155, %107, %cst_96 {dimension_numbers = #tpu.dot_dimension_numbers<[1], [0], [0], [1], [0, 0, 1, 1], [], []>} : vector<16x8xf32>, vector<8x128xf32>, vector<16x128xf32> -> vector<16x128xf32>
    %158 = vector.broadcast %156 : vector<16x1xf32> to vector<16x128xf32>
    %159 = arith.addf %157, %158 : vector<16x128xf32>
    %160 = arith.addf %154, %159 : vector<16x128xf32>
    %cst_97 = arith.constant 0.000000e+00 : f32
    %161 = vector.broadcast %cst_97 : f32 to vector<16x128xf32>
    %162 = arith.maximumf %160, %161 : vector<16x128xf32>
    %c0_98 = arith.constant 0 : index
    %c0_99 = arith.constant 0 : index
    %163 = vector.load %arg23[%c0_98, %c0_99] : memref<1x16xf32, #tpu.memory_space<vmem>>, vector<1x16xf32>
    %c0_100 = arith.constant 0 : index
    %c0_101 = arith.constant 0 : index
    %164 = vector.load %arg24[%c0_100, %c0_101] : memref<1x1xf32, #tpu.memory_space<vmem>>, vector<1x1xf32>
    %165 = tpu.iota {dimensions = array<i32: 0>} : vector<128x2xi32>
    %166 = tpu.iota {dimensions = array<i32: 1>} : vector<128x2xi32>
    %c16_i32_102 = arith.constant 16 : i32
    %167 = vector.broadcast %c16_i32_102 : i32 to vector<128x2xi32>
    %168 = arith.muli %166, %167 : vector<128x2xi32>
    %c15_i32 = arith.constant 15 : i32
    %169 = vector.broadcast %c15_i32 : i32 to vector<128x2xi32>
    %170 = arith.addi %168, %169 : vector<128x2xi32>
    %171 = arith.cmpi eq, %165, %170 : vector<128x2xi32>
    %cst_103 = arith.constant 1.000000e+00 : f32
    %cst_104 = arith.constant 0.000000e+00 : f32
    %172 = vector.broadcast %cst_103 : f32 to vector<128x2xf32>
    %173 = vector.broadcast %cst_104 : f32 to vector<128x2xf32>
    %174 = arith.select %171, %172, %173 : vector<128x2xi1>, vector<128x2xf32>
    %cst_105 = arith.constant dense<0.000000e+00> : vector<16x2xf32>
    %175 = tpu.matmul %162, %174, %cst_105 {dimension_numbers = #tpu.dot_dimension_numbers<[1], [0], [0], [1], [0, 0, 1, 1], [], []>} : vector<16x128xf32>, vector<128x2xf32>, vector<16x2xf32> -> vector<16x2xf32>
    %cst_106 = arith.constant dense<0.000000e+00> : vector<1x2xf32>
    %176 = tpu.matmul %163, %175, %cst_106 {dimension_numbers = #tpu.dot_dimension_numbers<[1], [0], [0], [1], [0, 0, 1, 1], [], []>} : vector<1x16xf32>, vector<16x2xf32>, vector<1x2xf32> -> vector<1x2xf32>
    %177 = vector.broadcast %164 : vector<1x1xf32> to vector<1x2xf32>
    %178 = arith.addf %176, %177 : vector<1x2xf32>
    %c0_107 = arith.constant 0 : index
    %c0_108 = arith.constant 0 : index
    %179 = vector.load %arg25[%c0_107, %c0_108] : memref<1x2xf32, #tpu.memory_space<vmem>>, vector<1x2xf32>
    tpu.vector_store %arg25[%c0_107, %c0_108], %178 {strides = array<i32>} : memref<1x2xf32, #tpu.memory_space<vmem>>, vector<1x2xf32>,
    return
  }
}

</mosaic_0001>

<bundles_post_ra>
// kernel: tpu_custom_call.1
= control target key start
LH: loop header
LB: loop body
LE: loop exit
PB: predicated region body
PF: predicated region fallthrough
CT: control target
= control target key end

     0   :  { %s4079_s0 = inlined_call_operand.vmem [shape: f32[4,128], index: 0, kind: input, shape index: {}]   ;;  %s4080_s1 = inlined_call_operand.vmem [shape: f32[8,4], index: 1, kind: input, shape index: {}]   ;;  %s4081_s2 = inlined_call_operand.vmem [shape: f32[8,4], index: 2, kind: input, shape index: {}]   ;;  %s4082_s3 = inlined_call_operand.vmem [shape: f32[8,1], index: 3, kind: input, shape index: {}]   ;;  %s4083_s4 = inlined_call_operand.vmem [shape: f32[8,8], index: 4, kind: input, shape index: {}]   ;;  %s4084_s5 = inlined_call_operand.vmem [shape: f32[8,8], index: 5, kind: input, shape index: {}]   ;;  %s4085_s6 = inlined_call_operand.vmem [shape: f32[8,1], index: 6, kind: input, shape index: {}]   ;;  %s4086_s7 = inlined_call_operand.vmem [shape: f32[8,4], index: 7, kind: input, shape index: {}]   ;;  %s4087_s8 = inlined_call_operand.vmem [shape: f32[8,1], index: 8, kind: input, shape index: {}]   ;;  %s4088_s9 = inlined_call_operand.vmem [shape: f32[8,8], index: 9, kind: input, shape index: {}]   ;;  %s4089_s10 = inlined_call_operand.vmem [shape: f32[8,8], index: 10, kind: input, shape index: {}]   ;;  %s4090_s11 = inlined_call_operand.vmem [shape: f32[8,1], index: 11, kind: input, shape index: {}]   ;;  %s4091_s12 = inlined_call_operand.vmem [shape: f32[8,8], index: 12, kind: input, shape index: {}]   ;;  %s4092_s13 = inlined_call_operand.vmem [shape: f32[8,8], index: 13, kind: input, shape index: {}]   ;;  %s4093_s14 = inlined_call_operand.vmem [shape: f32[8,1], index: 14, kind: input, shape index: {}]   ;;  %s4094_s15 = inlined_call_operand.vmem [shape: f32[16,8], index: 15, kind: input, shape index: {}]   ;;  %s4095_s16 = inlined_call_operand.vmem [shape: f32[16,8], index: 16, kind: input, shape index: {}]   ;;  %s4096_s17 = inlined_call_operand.vmem [shape: f32[16,1], index: 17, kind: input, shape index: {}]   ;;  %s4097_s18 = inlined_call_operand.vmem [shape: f32[16,16], index: 18, kind: input, shape index: {}]   ;;  %s4098_s19 = inlined_call_operand.vmem [shape: f32[16,16], index: 19, kind: input, shape index: {}]   ;;  %s4099_s20 = inlined_call_operand.vmem [shape: f32[16,1], index: 20, kind: input, shape index: {}]   ;;  %s4100_s21 = inlined_call_operand.vmem [shape: f32[16,8], index: 21, kind: input, shape index: {}]   ;;  %s4101_s22 = inlined_call_operand.vmem [shape: f32[16,1], index: 22, kind: input, shape index: {}]   ;;  %s4102_s23 = inlined_call_operand.vmem [shape: f32[1,16], index: 23, kind: input, shape index: {}]   ;;  %s4103_s24 = inlined_call_operand.<no memory space> [shape: f32[1,1], index: 24, kind: input, shape index: {}]   ;;  %s4104_s25 = inlined_call_operand.hbm [shape: f32[1,2], index: 25, kind: output, shape index: {}]  }
   0x1   :  { %4132 = sst [smem:[#allocation6_spill]] %s4079_s0  ;;  %v30_v0 = vstv %s4103_s24 }
   0x2   :  { %4133 = sst [smem:[#allocation7_spill]] %s4080_s1  ;;  %31 = vst [vmem:[#allocation2] sm:$0x1] %v30_v0 }
   0x3   :  { %4134 = sst [smem:[#allocation8_spill]] %s4081_s2 }
   0x4   :  { %4135 = sst [smem:[#allocation9_spill]] %s4082_s3 }
   0x5   :  { %4136 = sst [smem:[#allocation10_spill]] %s4083_s4 }
   0x6   :  { %4137 = sst [smem:[#allocation11_spill]] %s4084_s5 }
   0x7   :  { %4138 = sst [smem:[#allocation12_spill]] %s4085_s6 }
   0x8   :  { %4139 = sst [smem:[#allocation13_spill]] %s4086_s7 }
   0x9   :  { %4140 = sst [smem:[#allocation14_spill]] %s4087_s8 }
   0xa   :  { %4141 = sst [smem:[#allocation15_spill]] %s4088_s9 }
   0xb   :  { %v84_v1 = vlaneseq  ;;  %v2934_v2 = vmov 0.0|0.0  }
   0xc   :  { %2703 = vmatprep.subr.bf16.mxu0 %v2934_v2 }
   0xd   :  { %32 = vsyncpa [#allocation4], 0  ;;  %v3074_v3 = vshrl.u32 %v84_v1, 7  ;;  %v3076_v4 = vand.u32 127, %v84_v1  ;;  %vm4108_vm0 = vmmov 0   ;;  %v2936_v5 = vmov 0.0  }
   0xe   :  { %2409 = vmatprep.mubr.msk.f32.mxu0 %vm4108_vm0, %v2936_v5  ;;  %2417 = vmatprep.subr.mxu1 %v2936_v5  ;;  %v2937_v16 = vmov 1.0|1.0   ;;  %v4150_v21 = vmov 0  ;;  %v4154_v25 = vmov 0  ;;  %v4156_v27 = vmov 0  ;;  %s4176_s30 = sld [smem:[#allocation6_spill]] }
   0xf   :  { %2419 = vmatprep.mubr.msk.f32.mxu1 %vm4108_vm0, %v2936_v5  ;;  %v3084_v6 = vadd.s32 8, %v3074_v3  ;;  %v3087_v7 = vadd.s32 4294967295, %v3076_v4  ;;  %v3090_v8 = vand.u32 15, %v3076_v4  ;;  %v3093_v9 = vadd.s32 16, %v3074_v3  ;;  %s4178_s26 = sld [smem:[#allocation8_spill]]  ;;  %s4179_s27 = sld [smem:[#allocation9_spill]] }
  0x10   :  { %v3096_v10 = vadd.s32 24, %v3074_v3  ;;  %v3104_v11 = vadd.s32 32, %v3074_v3  ;;  %v3115_v13 = vadd.s32 40, %v3074_v3  ;;  %v3130_v15 = vadd.s32 48, %v3074_v3  ;;  %s4180_s9 = sld [smem:[#allocation12_spill]]  ;;  %v763_v45 = vld [vmem:[%s4093_s14] sm:$0xff] }
  0x11   :  { %vm104_vm1 = vcmp.eq.s32.totalorder %v3074_v3, %v3087_v7  ;;  %vm105_vm2 = vcmp.eq.s32.totalorder %v3084_v6, %v3087_v7  ;;  %vm132_vm3 = vcmp.ge.s32.totalorder %v3090_v8, 1  ;;  %vm106_vm5 = vcmp.eq.s32.totalorder %v3093_v9, %v3087_v7  ;;  %v1267_v46 = vld [vmem:[%s4096_s17 + $0x8] sm:$0xff]  ;;  %s4181_s1 = sld [smem:[#allocation7_spill]]  ;;  %v760_v62 = vld [vmem:[%s4090_s11] sm:$0xff]  ;;  %s2939_s8 = smov [#allocation3]  }
  0x12   :  { %vm3108_vm4 = vmand %vm104_vm1, %vm132_vm3  ;;  %vm107_vm7 = vcmp.eq.s32.totalorder %v3096_v10, %v3087_v7  ;;  %vm108_vm10 = vcmp.eq.s32.totalorder %v3104_v11, %v3087_v7  ;;  %v3147_v18 = vadd.s32 56, %v3074_v3  ;;  %vm109_vm12 = vcmp.eq.s32.totalorder %v3115_v13, %v3087_v7  ;;  %v1273_v47 = vld [vmem:[%s4099_s20 + $0x8] sm:$0xff]  ;;  %v1266_v63 = vld [vmem:[%s4096_s17] sm:$0xff]  ;;  %s4235_s4 = sld [smem:[#allocation15_spill]] }
  0x13   :  { %vm3119_vm6 = vmand %vm105_vm2, %vm132_vm3  ;;  %v3163_v20 = vadd.s32 64, %v3074_v3  ;;  %vm110_vm15 = vcmp.eq.s32.totalorder %v3130_v15, %v3087_v7  ;;  %v3174_v22 = vadd.s32 72, %v3074_v3  ;;  %v3196_v24 = vadd.s32 80, %v3074_v3  ;;  %v1775_v48 = vld [vmem:[%s4101_s22 + $0x8] sm:$0xff]  ;;  %v1272_v0 = vld [vmem:[%s4099_s20] sm:$0xff]  ;;  %s4199_s20 = sld [smem:[#allocation10_spill]] }
  0x14   :  { %vm4106_vm8 = vmpackc.low %vm3119_vm6, %vm3108_vm4  ;;  %vm111_vm2 = vcmp.eq.s32.totalorder %v3147_v18, %v3087_v7  ;;  %v3207_v26 = vadd.s32 88, %v3074_v3  ;;  %v4158_v28 = vmov 0  ;;  %v3237_v29 = vadd.s32 96, %v3074_v3  ;;  %v3353_v40 = vld [vmem:[%s4176_s30] sm:$0xf] }
  0x15   :  { %2705 = vmatpush3.bf16.msk.msra.mxu0 %vm4106_vm8, %v2937_v16  ;;  %vm3140_vm9 = vmand %vm106_vm5, %vm132_vm3  ;;  %vm114_vm8 = vcmp.eq.s32.totalorder %v3196_v24, %v3087_v7  ;;  %v4160_v30 = vmov 0  ;;  %v3248_v31 = vadd.s32 104, %v3074_v3  ;;  %v3278_v34 = vadd.s32 112, %v3074_v3  ;;  %v166_v41 = vld [vmem:[%s4178_s26] sm:$0xff]  ;;  %s4203_s26 = sld [smem:[#allocation13_spill]] }
  0x16   :  { %2706 = vmatprep.subr.bf16.mxu0 %v2934_v2  ;;  %vm3152_vm11 = vmand %vm107_vm7, %vm132_vm3  ;;  %vm115_vm0 = vcmp.eq.s32.totalorder %v3207_v26, %v3087_v7  ;;  %v3285_v35 = vadd.s32 120, %v3074_v3  ;;  %v167_v42 = vld [vmem:[%s4179_s27] sm:$0xff]  ;;  %v2938_v43 = vmov 0   ;;  %s4195_s27 = sld [smem:[#allocation11_spill]]  ;;  %v3475_v12 = vadd.s32 4294967294, %v3076_v4 }
  0x17   :  { %vm4105_vm13 = vmpackc.low %vm3152_vm11, %vm3140_vm9  ;;  %2908 = vset.pattern.permute.xlu0 %v2938_v43  ;;  %2909 = vset.pattern.permute.xlu1 %v2938_v43  ;;  %v170_v44 = vld [vmem:[%s4180_s9] sm:$0xff]  ;;  %s4196_s9 = sld [smem:[#allocation14_spill]]  ;;  %v4209_v33 = vmov 0  ;;  %v4211_v36 = vmov 0  ;;  %v4217_v39 = vmov 0 }
  0x18   :  { %vm3167_vm14 = vmand %vm108_vm10, %vm132_vm3  ;;  %vm112_vm10 = vcmp.eq.s32.totalorder %v3163_v20, %v3087_v7  ;;  %397 = vperm.xlu0 %2908, %v167_v42   ;;  %v165_v49 = vld [vmem:[%s4181_s1] sm:$0xff]  ;;  %v4224_v42 = vmov 0 }
  0x19   :  { %v4151_v21 = vsel %vm3167_vm14, 4294967295, %v4150_v21  ;;  %2708 = vmatpush3.bf16.msk.msra.mxu0 %vm4105_vm13, %v2937_v16  ;;  %vm3184_vm1 = vmand %vm109_vm12, %vm132_vm3  ;;  %vm113_vm13 = vcmp.eq.s32.totalorder %v3174_v22, %v3087_v7  ;;  %v1774_v1 = vld [vmem:[%s4101_s22] sm:$0xff] }
  0x1a   :  { %2709 = vmatprep.subr.bf16.mxu0 %v2934_v2  ;;  %vm4107_vm5 = vmpackc.low %vm3184_vm1, %vm3167_vm14  ;;  %v168_v17 = vld [vmem:[%s4199_s20] sm:$0xff] }
  0x1b   :  { %vm3200_vm7 = vmand %vm110_vm15, %vm132_vm3  ;;  %v1264_v43 = vld [vmem:[%s4095_s16] sm:$0xff] }
  0x1c   :  { %v4155_v25 = vsel %vm3200_vm7, 4294967295, %v4154_v25  ;;  %vm3211_vm12 = vmand %vm111_vm2, %vm132_vm3  ;;  %621 = vperm.xlu0 %2908, %v170_v44   ;;  %v169_v60 = vld [vmem:[%s4195_s27] sm:$0xff]  ;;  %s2072_s27 = sshll.u32 %s2939_s8, 4  ;;  %s2073_s27 = int_to_ptr.vmem [resolvable:$true] %s2072_s27 }
  0x1d   :  { %v4157_v27 = vsel %vm3211_vm12, 4294967295, %v4156_v27  ;;  %2711 = vmatpush3.bf16.msk.msra.mxu0 %vm4107_vm5, %v2937_v16  ;;  %vm4111_vm15 = vmpackc.low %vm3211_vm12, %vm3200_vm7  ;;  %vm118_vm12 = vcmp.eq.s32.totalorder %v3278_v34, %v3087_v7  ;;  %v627_v61 = vld [vmem:[%s4196_s9] sm:$0xff]  ;;  %p2915_p1 = scmp.lt.s32.totalorder %s2073_s27, %s2073_s27 }
  0x1e   :  { %2712 = vmatprep.subr.bf16.mxu0 %v2934_v2  ;;  %vm3230_vm2 = vmand %vm112_vm10, %vm132_vm3  ;;  %vm116_vm10 = vcmp.eq.s32.totalorder %v3237_v29, %v3087_v7  ;;  %630 = vperm.xlu1 %2909, %v627_v61  }
  0x1f   :  { %v4159_v28 = vsel %vm3230_vm2, 4294967295, %v4158_v28  ;;  %vm3241_vm5 = vmand %vm113_vm13, %vm132_vm3 }
  0x20   :  { %v4161_v30 = vsel %vm3241_vm5, 4294967295, %v4160_v30  ;;  %vm3262_vm13 = vmand %vm114_vm8, %vm132_vm3  ;;  %1205 = vperm.xlu0 %2908, %v763_v45  }
  0x21   :  { %2714 = vmatpush3.bf16.msk.msra.mxu0 %vm4111_vm15, %v2937_v16  ;;  %vm3269_vm14 = vmand %vm115_vm0, %vm132_vm3  ;;  %vm117_vm15 = vcmp.eq.s32.totalorder %v3248_v31, %v3087_v7 }
  0x22   :  { %2715 = vmatprep.subr.bf16.mxu0 %v2934_v2  ;;  %vm4166_vm0 = vmpackc.low %vm3241_vm5, %vm3230_vm2  ;;  %982 = vperm.xlu1 %2909, %v760_v62  }
  0x23   :  { %vm3295_vm7 = vmand %vm116_vm10, %vm132_vm3 }
  0x24   :  { %vm3302_vm8 = vmand %vm117_vm15, %vm132_vm3  ;;  %1513 = vperm.xlu0 %2908, %v1267_v46  }
  0x25   :  { %2717 = vmatpush3.bf16.msk.msra.mxu0 %vm4166_vm0, %v2937_v16  ;;  %vm119_vm0 = vcmp.eq.s32.totalorder %v3285_v35, %v3087_v7  ;;  %vm4171_vm10 = vmpackc.low %vm3269_vm14, %vm3262_vm13  ;;  %v1872_v7 = vld [vmem:[#allocation2] sm:$0x1] }
  0x26   :  { %2718 = vmatprep.subr.bf16.mxu0 %v2934_v2  ;;  %vm4119_vm15 = vmpackc.low %vm3302_vm8, %vm3295_vm7  ;;  %1508 = vperm.xlu1 %2909, %v1266_v63  }
  0x27   :  { %vm3323_vm2 = vmand %vm118_vm12, %vm132_vm3 }
  0x28   :  { %vm3329_vm5 = vmand %vm119_vm0, %vm132_vm3  ;;  %vm4177_vm3 = vmmov 0   ;;  %vm4118_vm0 = vcmask 1043456   ;;  %1765 = vperm.xlu0 %2908, %v1273_v47  }
  0x29   :  { %2720 = vmatpush3.bf16.msk.msra.mxu0 %vm4171_vm10, %v2937_v16  ;;  %vm4116_vm12 = vmpackc.low %vm3329_vm5, %vm3323_vm2  ;;  %vm4117_vm10 = vcmask 31744  }
  0x2a   :  { %2721 = vmatprep.subr.bf16.mxu0 %v2934_v2  ;;  %1760 = vperm.xlu1 %2909, %v1272_v0  }
  0x2c   :  { %1783 = vperm.xlu0 %2908, %v1775_v48  }
  0x2d   :  { %2723 = vmatpush3.bf16.msk.msra.mxu0 %vm4119_vm15, %v2937_v16 }
  0x2e   :  { %2724 = vmatprep.subr.bf16.mxu0 %v2934_v2  ;;  %1778 = vperm.xlu1 %2909, %v1774_v1  }
  0x31   :  { %2726 = vmatpush3.bf16.msk.msra.mxu0 %vm4116_vm12, %v2937_v16  ;;  %vm4182_vm12 = vmpackc.low %vm3119_vm6, %vm3108_vm4  ;;  %vm4184_vm4 = vnez %v4151_v21 }
  0x32   :  { %2412 = vmatprep.subr.mxu0 %v2936_v5  ;;  %vm4185_vm6 = vmpackc.low %vm3184_vm1, %vm4184_vm4  ;;  %1984 = vperm.xlu1 %2909, %v1872_v7   ;;  %vm711_vm4 = vcmp.eq.s32.totalorder %v3093_v9, %v3475_v12 }
  0x33   :  { %vm4192_vm1 = vmpackc.low %vm3269_vm14, %vm3262_vm13  ;;  %vm4122_vm14 = vcmask 64512  }
  0x34   :  { %2410 = vmatmul.mubr.f32.vlgmr.msra.gmra.mrb[0].mxu0 %v3353_v40 }
  0x35   :  { %2414 = vmatprep.mubr.msk.f32.mxu0 %vm4177_vm3, %v2936_v5  ;;  %2413 = vmatpush3.msk.msra.mxu0 %vm4118_vm0, %v3353_v40 }
  0x36   :  { %2457 = vmatprep.subr.mxu0 %v2936_v5 }
  0x38   :  { %2415 = vmatmul.mubr.msk.f32.vlgmr.msra.gmra.mrb[2].mxu0 %vm4117_vm10, %v166_v41  ;;  %v4222_v41 = vmov 0 }
  0x39   :  { %2459 = vmatprep.mubr.msk.f32.mxu0 %vm4177_vm3, %v2936_v5 }
  0x97   :  { %v398_v57 = vpop.permute.xlu0 %397 }
 0x107   :  { %v237_v50 = vpop.f32.mrb[0].mxu0 }
 0x108   :  { %v2411_v51 = vpop.f32.mrb[1].mxu0  ;;  %2418 = vmatpush3.msk.msra.mxu1 %vm4118_vm0, %v237_v50  ;;  %vm4187_vm0 = vnez %v4155_v25  ;;  %v622_v50 = vpop.permute.xlu0 %621 }
 0x109   :  { %2420 = vmatmul.mubr.msk.f32.vlgmr.msra.gmra.mrb[0].mxu1 %vm4117_vm10, %v165_v49  ;;  %2727 = vmatprep.subr.bf16.mxu1 %v2934_v2  ;;  %vm4183_vm10 = vmpackc.low %vm3152_vm11, %vm3140_vm9  ;;  %vm4189_vm9 = vnez %v4161_v30  ;;  %vm4190_vm11 = vnez %v4159_v28  ;;  %v626_v28 = vld [vmem:[%s4203_s26] sm:$0xff] }
 0x10a   :  { %2729 = vmatpush3.bf16.msk.msra.mxu1 %vm4182_vm12, %v2937_v16  ;;  %2454 = vmatprep.mubr.msk.f32.mxu1 %vm4177_vm3, %v2936_v5  ;;  %vm4186_vm12 = vnez %v4157_v27 }
 0x10b   :  { %2730 = vmatprep.subr.bf16.mxu1 %v2934_v2  ;;  %vm4188_vm15 = vmpackc.low %vm4186_vm12, %vm4187_vm0  ;;  %v315_v52 = vpop.f32.mrb[2].mxu0 }
 0x10c   :  { %vm4194_vm0 = vmpackc.low %vm3329_vm5, %vm3323_vm2  ;;  %v2416_v53 = vpop.f32.mrb[3].mxu0  ;;  %vm709_vm5 = vcmp.eq.s32.totalorder %v3074_v3, %v3475_v12  ;;  %vm710_vm2 = vcmp.eq.s32.totalorder %v3084_v6, %v3475_v12 }
 0x10e   :  { %2732 = vmatpush3.bf16.msk.msra.mxu1 %vm4183_vm10, %v2937_v16  ;;  %vm4191_vm10 = vmpackc.low %vm4189_vm9, %vm4190_vm11  ;;  %vm4202_vm9 = vcmask 1043456  }
 0x10f   :  { %2733 = vmatprep.subr.bf16.mxu1 %v2934_v2 }
 0x112   :  { %2735 = vmatpush3.bf16.msk.msra.mxu1 %vm4185_vm6, %v2937_v16  ;;  %vm712_vm6 = vcmp.eq.s32.totalorder %v3096_v10, %v3475_v12 }
 0x113   :  { %2736 = vmatprep.subr.bf16.mxu1 %v2934_v2 }
 0x116   :  { %2738 = vmatpush3.bf16.msk.msra.mxu1 %vm4188_vm15, %v2937_v16  ;;  %vm4193_vm15 = vmpackc.low %vm3302_vm8, %vm3295_vm7  ;;  %vm725_vm7 = vcmp.ge.s32.totalorder %v3090_v8, 2 }
 0x117   :  { %2739 = vmatprep.subr.bf16.mxu1 %v2934_v2  ;;  %vm3484_vm13 = vmand %vm709_vm5, %vm725_vm7 }
 0x118   :  { %vm3493_vm8 = vmand %vm710_vm2, %vm725_vm7  ;;  %vm715_vm2 = vcmp.eq.s32.totalorder %v3130_v15, %v3475_v12 }
 0x119   :  { %vm4120_vm12 = vmpackc.low %vm3493_vm8, %vm3484_vm13 }
 0x11a   :  { %2741 = vmatpush3.bf16.msk.msra.mxu1 %vm4191_vm10, %v2937_v16  ;;  %vm3516_vm11 = vmand %vm711_vm4, %vm725_vm7 }
 0x11b   :  { %2742 = vmatprep.subr.bf16.mxu1 %v2934_v2  ;;  %vm3523_vm10 = vmand %vm712_vm6, %vm725_vm7  ;;  %vm716_vm6 = vcmp.eq.s32.totalorder %v3147_v18, %v3475_v12 }
 0x11c   :  { %vm4121_vm5 = vmpackc.low %vm3523_vm10, %vm3516_vm11 }
 0x11e   :  { %2744 = vmatpush3.bf16.msk.msra.mxu1 %vm4192_vm1, %v2937_v16  ;;  %vm713_vm1 = vcmp.eq.s32.totalorder %v3104_v11, %v3475_v12 }
 0x11f   :  { %2745 = vmatprep.subr.bf16.mxu1 %v2934_v2  ;;  %vm3549_vm4 = vmand %vm713_vm1, %vm725_vm7 }
 0x120   :  { %v4210_v33 = vsel %vm3549_vm4, 4294967295, %v4209_v33  ;;  %vm3575_vm1 = vmand %vm716_vm6, %vm725_vm7  ;;  %vm719_vm6 = vcmp.eq.s32.totalorder %v3196_v24, %v3475_v12 }
 0x122   :  { %2747 = vmatpush3.bf16.msk.msra.mxu1 %vm4193_vm15, %v2937_v16  ;;  %vm4208_vm15 = vcmask 31744  }
 0x123   :  { %2748 = vmatprep.subr.bf16.mxu1 %v2934_v2 }
 0x126   :  { %2750 = vmatpush3.bf16.msk.msra.mxu1 %vm4194_vm0, %v2937_v16  ;;  %vm714_vm0 = vcmp.eq.s32.totalorder %v3115_v13, %v3475_v12 }
 0x127   :  { %2512 = vmatprep.subr.mxu1 %v2936_v5 }
 0x1dc   :  { %v391_v54 = vpop.f32.mrb[0].mxu1 }
 0x1dd   :  { %v392_v55 = vadd.f32 %v391_v54, %v315_v52  ;;  %v2421_v56 = vpop.f32.mrb[1].mxu1  ;;  %v631_v52 = vpop.permute.xlu1 %630 }
 0x1df   :  { %v400_v58 = vadd.f32 %v398_v57, %v392_v55 }
 0x1e1   :  { %v401_v59 = vmax.f32 %v400_v58, 0.0  ;;  %v983_v14 = vpop.permute.xlu1 %982 }
 0x1e3   :  { %2455 = vmatmul.mubr.f32.vlgmr.msra.gmra.mrb[2].mxu1 %v401_v59  ;;  %2458 = vmatpush3.msra.mxu0 %v401_v59  ;;  %v759_v59 = vld [vmem:[%s4089_s10] sm:$0xff]  ;;  %s2914_s10 = scalar_lea.vmem %s2073_s27, 32 }
 0x1e4   :  { %2460 = vmatmul.mubr.msk.f32.vlgmr.msra.gmra.mrb[4].mxu0 %vm4122_vm14, %v169_v60  ;;  %2462 = vmatprep.subr.mxu0 %v2936_v5  ;;  %v758_v60 = vld [vmem:[%s4235_s4] sm:$0xff]  ;;  %s2910_s4 = scalar_lea.vmem %s2073_s27, 16 }
 0x1e5   :  { %2464 = vmatprep.mubr.msk.f32.mxu0 %vm4177_vm3, %v2936_v5  ;;  %2514 = vmatprep.mubr.msk.f32.mxu1 %vm4177_vm3, %v2936_v5  ;;  %p2911_p0 = scmp.ne.s32.totalorder %s2073_s27, %s2910_s4  ;;  %p2916_p2 = scmp.lt.s32.totalorder %s2914_s10, %s2910_s4 }
 0x1e7   :  { %p2917_p3 = por %p2916_p2, %p2915_p1 }
 0x1e9   :  { %p2918_p4 = pnand %p2917_p3, %p2911_p0 }
 0x2b6   :  { %v468_v21 = vpop.f32.mrb[2].mxu1 }
 0x2b7   :  { %v2456_v23 = vpop.f32.mrb[3].mxu1  ;;  %2463 = vmatpush3.msra.mxu0 %v468_v21  ;;  %v542_v25 = vpop.f32.mrb[4].mxu0  ;;  %v762_v21 = vld [vmem:[%s4092_s13] sm:$0xff] }
 0x2b8   :  { %2465 = vmatmul.mubr.msk.f32.vlgmr.msra.gmra.mrb[6].mxu0 %vm4122_vm14, %v168_v17  ;;  %2467 = vmatprep.subr.mxu0 %v2936_v5  ;;  %v2461_v27 = vpop.f32.mrb[5].mxu0  ;;  %v3793_v23 = vadd.s32 4294967292, %v3076_v4 }
 0x2b9   :  { %2468 = vmatpush3.msk.msra.mxu0 %vm4202_vm9, %v3353_v40  ;;  %2469 = vmatprep.mubr.msk.f32.mxu0 %vm4177_vm3, %v2936_v5  ;;  %vm3557_vm9 = vmand %vm714_vm0, %vm725_vm7 }
 0x2ba   :  { %2751 = vmatprep.subr.bf16.mxu0 %v2934_v2  ;;  %v4212_v36 = vsel %vm3557_vm9, 4294967295, %v4211_v36  ;;  %vm4123_vm0 = vmpackc.low %vm3557_vm9, %vm3549_vm4 }
 0x2bb   :  { %vm3628_vm4 = vmand %vm719_vm6, %vm725_vm7 }
 0x2bc   :  { %2470 = vmatmul.mubr.msk.f32.vlgmr.msra.gmra.mrb[8].mxu0 %vm4208_vm15, %v626_v28  ;;  %vm3563_vm15 = vmand %vm715_vm2, %vm725_vm7  ;;  %vm717_vm2 = vcmp.eq.s32.totalorder %v3163_v20, %v3475_v12  ;;  %v4223_v41 = vsel %vm3628_vm4, 4294967295, %v4222_v41 }
 0x2bd   :  { %2753 = vmatpush3.bf16.msk.msra.mxu0 %vm4120_vm12, %v2937_v16  ;;  %2504 = vmatprep.mubr.msk.f32.mxu0 %vm4177_vm3, %v2936_v5  ;;  %vm718_vm12 = vcmp.eq.s32.totalorder %v3174_v22, %v3475_v12 }
 0x2be   :  { %2754 = vmatprep.subr.bf16.mxu0 %v2934_v2  ;;  %vm3607_vm14 = vmand %vm718_vm12, %vm725_vm7 }
 0x2c1   :  { %2756 = vmatpush3.bf16.msk.msra.mxu0 %vm4121_vm5, %v2937_v16  ;;  %vm3600_vm5 = vmand %vm717_vm2, %vm725_vm7 }
 0x2c2   :  { %2757 = vmatprep.subr.bf16.mxu0 %v2934_v2  ;;  %v4218_v39 = vsel %vm3600_vm5, 4294967295, %v4217_v39  ;;  %vm4221_vm2 = vmpackc.low %vm3575_vm1, %vm3563_vm15 }
 0x2c3   :  { %vm4126_vm12 = vmpackc.low %vm3607_vm14, %vm3600_vm5 }
 0x2c5   :  { %2759 = vmatpush3.bf16.msk.msra.mxu0 %vm4123_vm0, %v2937_v16  ;;  %vm720_vm0 = vcmp.eq.s32.totalorder %v3207_v26, %v3475_v12 }
 0x2c6   :  { %2760 = vmatprep.subr.bf16.mxu0 %v2934_v2  ;;  %vm3634_vm9 = vmand %vm720_vm0, %vm725_vm7  ;;  %vm721_vm0 = vcmp.eq.s32.totalorder %v3237_v29, %v3475_v12 }
 0x2c7   :  { %v4225_v42 = vsel %vm3634_vm9, 4294967295, %v4224_v42  ;;  %vm4128_vm6 = vmpackc.low %vm3634_vm9, %vm3628_vm4 }
 0x2c9   :  { %2762 = vmatpush3.bf16.msk.msra.mxu0 %vm4221_vm2, %v2937_v16  ;;  %vm722_vm2 = vcmp.eq.s32.totalorder %v3248_v31, %v3475_v12 }
 0x2ca   :  { %2763 = vmatprep.subr.bf16.mxu0 %v2934_v2  ;;  %vm3668_vm5 = vmand %vm722_vm2, %vm725_vm7  ;;  %vm724_vm2 = vcmp.eq.s32.totalorder %v3285_v35, %v3475_v12 }
 0x2cb   :  { %vm3695_vm9 = vmand %vm724_vm2, %vm725_vm7 }
 0x2cc   :  { %vm4237_vm2 = vmpackc.low %vm3493_vm8, %vm3484_vm13  ;;  %vm4240_vm13 = vnez %v4210_v33 }
 0x2cd   :  { %2765 = vmatpush3.bf16.msk.msra.mxu0 %vm4126_vm12, %v2937_v16  ;;  %vm3662_vm12 = vmand %vm721_vm0, %vm725_vm7  ;;  %vm723_vm0 = vcmp.eq.s32.totalorder %v3278_v34, %v3475_v12 }
 0x2ce   :  { %2766 = vmatprep.subr.bf16.mxu0 %v2934_v2  ;;  %vm3689_vm4 = vmand %vm723_vm0, %vm725_vm7  ;;  %vm4234_vm7 = vcmask 64512  }
 0x2cf   :  { %vm4236_vm0 = vmmov %vm4234_vm7 }
 0x2d1   :  { %2768 = vmatpush3.bf16.msk.msra.mxu0 %vm4128_vm6, %v2937_v16  ;;  %vm4131_vm6 = vmpackc.low %vm3668_vm5, %vm3662_vm12 }
 0x2d2   :  { %2769 = vmatprep.subr.bf16.mxu0 %v2934_v2 }
 0x2d5   :  { %2771 = vmatpush3.bf16.msk.msra.mxu0 %vm4131_vm6, %v2937_v16  ;;  %vm2773_vm6 = vmpackc.low %vm3695_vm9, %vm3689_vm4  ;;  %vm1229_vm4 = vcmp.ge.s32.totalorder %v3090_v8, 4  ;;  %vm1214_vm9 = vcmp.eq.s32.totalorder %v3084_v6, %v3793_v23 }
 0x2d6   :  { %2772 = vmatprep.subr.bf16.mxu0 %v2934_v2 }
 0x2d9   :  { %2774 = vmatpush3.bf16.msk.msra.mxu0 %vm2773_vm6, %v2937_v16 }
 0x2da   :  { %2507 = vmatprep.subr.mxu0 %v2936_v5 }
 0x38b   :  { %v615_v47 = vpop.f32.mrb[6].mxu0 }
 0x38c   :  { %v616_v48 = vadd.f32 %v615_v47, %v542_v25  ;;  %v2466_v49 = vpop.f32.mrb[7].mxu0  ;;  %v761_v25 = vld [vmem:[%s4091_s12] sm:$0xff]  ;;  %v1206_v47 = vpop.permute.xlu0 %1205 }
 0x38e   :  { %v624_v51 = vadd.f32 %v622_v50, %v616_v48 }
 0x38f   :  { %v702_v53 = vpop.f32.mrb[8].mxu0 }
 0x390   :  { %v625_v54 = vmax.f32 %v624_v51, 0.0  ;;  %v703_v55 = vadd.f32 %v702_v53, %v631_v52  ;;  %v2471_v56 = vpop.f32.mrb[9].mxu0  ;;  %v1265_v51 = vld [vmem:[%s4095_s16 + $0x8] sm:$0xff]  ;;  %v1262_v52 = vld [vmem:[%s4094_s15] sm:$0xff] }
 0x391   :  { %v1270_v56 = vld [vmem:[%s4098_s19] sm:$0xff] }
 0x392   :  { %v706_v57 = vadd.f32 %v703_v55, %v625_v54  ;;  %v1263_v54 = vld [vmem:[%s4094_s15 + $0x8] sm:$0xff] }
 0x394   :  { %v3710_v58 = vmax.f32 %v706_v57, 0.0  ;;  %v1514_v57 = vpop.permute.xlu0 %1513 }
 0x396   :  { %2505 = vmatmul.mubr.f32.vlgmr.msra.gmra.mrb[10].mxu0 %v3710_v58 }
 0x397   :  { %2508 = vmatpush3.msra.mxu0 %v3710_v58  ;;  %2509 = vmatprep.mubr.msk.f32.mxu0 %vm4177_vm3, %v2936_v5 }
 0x398   :  { %2552 = vmatprep.subr.mxu0 %v2936_v5 }
 0x39a   :  { %2510 = vmatmul.mubr.msk.f32.vlgmr.msra.gmra.mrb[12].mxu0 %vm4234_vm7, %v759_v59  ;;  %vm4238_vm7 = vmpackc.low %vm3523_vm10, %vm3516_vm11  ;;  %vm4243_vm11 = vnez %v4218_v39  ;;  %v1509_v59 = vpop.permute.xlu1 %1508 }
 0x39b   :  { %2554 = vmatprep.mubr.msk.f32.mxu0 %vm4177_vm3, %v2936_v5  ;;  %vm4244_vm10 = vmpackc.low %vm3607_vm14, %vm4243_vm11  ;;  %vm4249_vm14 = vcmask 64512   ;;  %vm1217_vm11 = vcmp.eq.s32.totalorder %v3104_v11, %v3793_v23 }
 0x469   :  { %v830_v61 = vpop.f32.mrb[10].mxu0 }
 0x46a   :  { %v2506_v62 = vpop.f32.mrb[11].mxu0  ;;  %2513 = vmatpush3.msra.mxu1 %v830_v61 }
 0x46b   :  { %2515 = vmatmul.mubr.msk.f32.vlgmr.msra.gmra.mrb[4].mxu1 %vm4236_vm0, %v758_v60  ;;  %2775 = vmatprep.subr.bf16.mxu1 %v2934_v2  ;;  %vm4239_vm0 = vnez %v4212_v36  ;;  %v1989_v36 = vsub.s32 0, %v3074_v3 }
 0x46c   :  { %2777 = vmatpush3.bf16.msk.msra.mxu1 %vm4237_vm2, %v2937_v16  ;;  %2549 = vmatprep.mubr.msk.f32.mxu1 %vm4177_vm3, %v2936_v5  ;;  %vm4241_vm8 = vmpackc.low %vm4239_vm0, %vm4240_vm13  ;;  %vm4246_vm0 = vnez %v4223_v41 }
 0x46d   :  { %2778 = vmatprep.subr.bf16.mxu1 %v2934_v2  ;;  %vm4242_vm2 = vmpackc.low %vm3575_vm1, %vm3563_vm15  ;;  %v903_v63 = vpop.f32.mrb[12].mxu0 }
 0x46e   :  { %vm4248_vm15 = vmpackc.low %vm3668_vm5, %vm3662_vm12  ;;  %v2511_v0 = vpop.f32.mrb[13].mxu0  ;;  %vm1213_vm5 = vcmp.eq.s32.totalorder %v3074_v3, %v3793_v23 }
 0x46f   :  { %vm1230_vm1 = vmand %vm1213_vm5, %vm1229_vm4 }
 0x470   :  { %2780 = vmatpush3.bf16.msk.msra.mxu1 %vm4238_vm7, %v2937_v16  ;;  %vm4245_vm7 = vnez %v4225_v42  ;;  %vm1231_vm12 = vmand %vm1214_vm9, %vm1229_vm4  ;;  %vm1219_vm9 = vcmp.eq.s32.totalorder %v3130_v15, %v3793_v23 }
 0x471   :  { %2781 = vmatprep.subr.bf16.mxu1 %v2934_v2  ;;  %vm4247_vm13 = vmpackc.low %vm4245_vm7, %vm4246_vm0  ;;  %vm1218_vm7 = vcmp.eq.s32.totalorder %v3115_v13, %v3793_v23 }
 0x474   :  { %2783 = vmatpush3.bf16.msk.msra.mxu1 %vm4241_vm8, %v2937_v16  ;;  %vm1216_vm8 = vcmp.eq.s32.totalorder %v3096_v10, %v3793_v23 }
 0x475   :  { %2784 = vmatprep.subr.bf16.mxu1 %v2934_v2  ;;  %vm1233_vm0 = vmand %vm1216_vm8, %vm1229_vm4 }
 0x478   :  { %2786 = vmatpush3.bf16.msk.msra.mxu1 %vm4242_vm2, %v2937_v16  ;;  %vm3811_vm2 = vmpackc.low %vm1231_vm12, %vm1230_vm1  ;;  %vm1220_vm1 = vcmp.eq.s32.totalorder %v3147_v18, %v3793_v23 }
 0x479   :  { %2787 = vmatprep.subr.bf16.mxu1 %v2934_v2  ;;  %vm1237_vm8 = vmand %vm1220_vm1, %vm1229_vm4 }
 0x47c   :  { %2789 = vmatpush3.bf16.msk.msra.mxu1 %vm4244_vm10, %v2937_v16 }
 0x47d   :  { %2790 = vmatprep.subr.bf16.mxu1 %v2934_v2 }
 0x480   :  { %2792 = vmatpush3.bf16.msk.msra.mxu1 %vm4247_vm13, %v2937_v16  ;;  %vm4252_vm13 = vmmov %vm4249_vm14 }
 0x481   :  { %2793 = vmatprep.subr.bf16.mxu1 %v2934_v2 }
 0x484   :  { %2795 = vmatpush3.bf16.msk.msra.mxu1 %vm4248_vm15, %v2937_v16  ;;  %vm1234_vm15 = vmand %vm1217_vm11, %vm1229_vm4  ;;  %vm1221_vm11 = vcmp.eq.s32.totalorder %v3163_v20, %v3793_v23 }
 0x485   :  { %2796 = vmatprep.subr.bf16.mxu1 %v2934_v2 }
 0x488   :  { %2798 = vmatpush3.bf16.msk.msra.mxu1 %vm2773_vm6, %v2937_v16  ;;  %vm1215_vm6 = vcmp.eq.s32.totalorder %v3093_v9, %v3793_v23 }
 0x489   :  { %vm1232_vm10 = vmand %vm1215_vm6, %vm1229_vm4 }
 0x48a   :  { %vm3835_vm5 = vmpackc.low %vm1233_vm0, %vm1232_vm10  ;;  %vm1222_vm10 = vcmp.eq.s32.totalorder %v3174_v22, %v3793_v23 }
 0x48b   :  { %vm1236_vm6 = vmand %vm1219_vm9, %vm1229_vm4  ;;  %vm1224_vm9 = vcmp.eq.s32.totalorder %v3207_v26, %v3793_v23 }
 0x48c   :  { %vm1238_vm0 = vmand %vm1221_vm11, %vm1229_vm4  ;;  %vm1225_vm11 = vcmp.eq.s32.totalorder %v3237_v29, %v3793_v23 }
 0x53e   :  { %v976_v1 = vpop.f32.mrb[4].mxu1 }
 0x53f   :  { %v977_v7 = vadd.f32 %v976_v1, %v903_v63  ;;  %v2516_v12 = vpop.f32.mrb[5].mxu1 }
 0x540   :  { %v1873_v12 = vmul.u32 16, %v3076_v4 }
 0x541   :  { %v985_v17 = vadd.f32 %v983_v14, %v977_v7  ;;  %v1271_v7 = vld [vmem:[%s4098_s19 + $0x8] sm:$0xff]  ;;  %v1268_v14 = vld [vmem:[%s4097_s18] sm:$0xff] }
 0x543   :  { %v986_v19 = vmax.f32 %v985_v17, 0.0  ;;  %v1874_v17 = vadd.s32 15, %v1873_v12 }
 0x545   :  { %2550 = vmatmul.mubr.f32.vlgmr.msra.gmra.mrb[6].mxu1 %v986_v19  ;;  %2553 = vmatpush3.msra.mxu0 %v986_v19 }
 0x546   :  { %2555 = vmatmul.mubr.msk.f32.vlgmr.msra.gmra.mrb[14].mxu0 %vm4249_vm14, %v762_v21  ;;  %2557 = vmatprep.subr.mxu0 %v2936_v5  ;;  %vm1235_vm14 = vmand %vm1218_vm7, %vm1229_vm4 }
 0x547   :  { %2559 = vmatprep.mubr.msk.f32.mxu0 %vm4177_vm3, %v2936_v5  ;;  %vm3843_vm12 = vmpackc.low %vm1235_vm14, %vm1234_vm15  ;;  %vm1223_vm14 = vcmp.eq.s32.totalorder %v3196_v24, %v3793_v23 }
 0x548   :  { %vm3862_vm7 = vmpackc.low %vm1237_vm8, %vm1236_vm6 }
 0x549   :  { %vm1240_vm1 = vmand %vm1223_vm14, %vm1229_vm4 }
 0x54a   :  { %vm1241_vm6 = vmand %vm1224_vm9, %vm1229_vm4  ;;  %vm1227_vm9 = vcmp.eq.s32.totalorder %v3278_v34, %v3793_v23 }
 0x54b   :  { %vm3891_vm8 = vmpackc.low %vm1241_vm6, %vm1240_vm1  ;;  %vm1228_vm1 = vcmp.eq.s32.totalorder %v3285_v35, %v3793_v23 }
 0x54c   :  { %vm1244_vm6 = vmand %vm1227_vm9, %vm1229_vm4 }
 0x618   :  { %v1053_v28 = vpop.f32.mrb[6].mxu1 }
 0x619   :  { %v2551_v30 = vpop.f32.mrb[7].mxu1  ;;  %2558 = vmatpush3.msra.mxu0 %v1053_v28  ;;  %v1126_v32 = vpop.f32.mrb[14].mxu0 }
 0x61a   :  { %2560 = vmatmul.mubr.msk.f32.vlgmr.msra.gmra.mrb[16].mxu0 %vm4252_vm13, %v761_v25  ;;  %2799 = vmatprep.subr.bf16.mxu0 %v2934_v2  ;;  %v2556_v33 = vpop.f32.mrb[15].mxu0  ;;  %vm1239_vm13 = vmand %vm1222_vm10, %vm1229_vm4  ;;  %vm1226_vm10 = vcmp.eq.s32.totalorder %v3248_v31, %v3793_v23 }
 0x61b   :  { %2801 = vmatpush3.bf16.msk.msra.mxu0 %vm3811_vm2, %v2937_v16  ;;  %2594 = vmatprep.mubr.msk.f32.mxu0 %vm4177_vm3, %v2936_v5  ;;  %vm3875_vm15 = vmpackc.low %vm1239_vm13, %vm1238_vm0  ;;  %v1871_v33 = vld [vmem:[%s4102_s23] sm:$0x1] }
 0x61c   :  { %2802 = vmatprep.subr.bf16.mxu0 %v2934_v2  ;;  %vm1242_vm0 = vmand %vm1225_vm11, %vm1229_vm4 }
 0x61d   :  { %vm1243_vm13 = vmand %vm1226_vm10, %vm1229_vm4 }
 0x61e   :  { %vm3907_vm14 = vmpackc.low %vm1243_vm13, %vm1242_vm0  ;;  %vm4267_vm0 = vcmask 64512  }
 0x61f   :  { %2804 = vmatpush3.bf16.msk.msra.mxu0 %vm3835_vm5, %v2937_v16  ;;  %vm1245_vm11 = vmand %vm1228_vm1, %vm1229_vm4  ;;  %2599 = vmatprep.mubr.msk.f32.mxu1 %vm4267_vm0, %v1264_v43  ;;  %vm1879_vm1 = vcmp.eq.s32.totalorder %v3104_v11, %v1874_v17  ;;  %v1772_v11 = vld [vmem:[%s4100_s21] sm:$0xff] }
 0x620   :  { %2805 = vmatprep.subr.bf16.mxu0 %v2934_v2  ;;  %vm3923_vm10 = vmpackc.low %vm1245_vm11, %vm1244_vm6  ;;  %vm1880_vm6 = vcmp.eq.s32.totalorder %v3115_v13, %v1874_v17  ;;  %v1773_v13 = vld [vmem:[%s4100_s21 + $0x8] sm:$0xff] }
 0x621   :  { %vm4268_vm4 = vmmov %vm4267_vm0 }
 0x622   :  { %vm4269_vm13 = vmmov %vm4267_vm0 }
 0x623   :  { %2807 = vmatpush3.bf16.msk.msra.mxu0 %vm3843_vm12, %v2937_v16  ;;  %vm4270_vm9 = vmmov %vm4267_vm0  ;;  %vm1882_vm0 = vcmp.eq.s32.totalorder %v3147_v18, %v1874_v17 }
 0x624   :  { %2808 = vmatprep.subr.bf16.mxu0 %v2934_v2  ;;  %vm2871_vm11 = vmpackc.low %vm1880_vm6, %vm1879_vm1  ;;  %vm1887_vm1 = vcmp.eq.s32.totalorder %v3237_v29, %v1874_v17  ;;  %vm1888_vm6 = vcmp.eq.s32.totalorder %v3248_v31, %v1874_v17 }
 0x627   :  { %2810 = vmatpush3.bf16.msk.msra.mxu0 %vm3862_vm7, %v2937_v16 }
 0x628   :  { %2811 = vmatprep.subr.bf16.mxu0 %v2934_v2 }
 0x62b   :  { %2813 = vmatpush3.bf16.msk.msra.mxu0 %vm3875_vm15, %v2937_v16 }
 0x62c   :  { %2814 = vmatprep.subr.bf16.mxu0 %v2934_v2 }
 0x62f   :  { %2816 = vmatpush3.bf16.msk.msra.mxu0 %vm3891_vm8, %v2937_v16 }
 0x630   :  { %2817 = vmatprep.subr.bf16.mxu0 %v2934_v2 }
 0x633   :  { %2819 = vmatpush3.bf16.msk.msra.mxu0 %vm3907_vm14, %v2937_v16 }
 0x634   :  { %2820 = vmatprep.subr.bf16.mxu0 %v2934_v2 }
 0x637   :  { %2822 = vmatpush3.bf16.msk.msra.mxu0 %vm3923_vm10, %v2937_v16 }
 0x6ed   :  { %v1199_v44 = vpop.f32.mrb[16].mxu0 }
 0x6ee   :  { %v1200_v45 = vadd.f32 %v1199_v44, %v1126_v32  ;;  %v2561_v46 = vpop.f32.mrb[17].mxu0 }
 0x6f0   :  { %v1208_v8 = vadd.f32 %v1206_v47, %v1200_v45 }
 0x6f2   :  { %v1209_v48 = vmax.f32 %v1208_v8, 0.0 }
 0x6f4   :  { %v1210_v49 = vadd.f32 %v1209_v48, %v3710_v58 }
 0x6f6   :  { %v3935_v50 = vmax.f32 %v1210_v49, 0.0 }
 0x6f8   :  { %2595 = vmatmul.mubr.f32.vlgmr.msra.gmra.mrb[18].mxu0 %v3935_v50  ;;  %2597 = vmatprep.subr.mxu1 %v3935_v50 }
 0x6f9   :  { %2598 = vmatpush3.msra.mxu1 %v3935_v50 }
 0x6fa   :  { %2600 = vmatmul.mubr.msk.f32.vlgmr.msra.gmra.mrb[8].mxu1 %vm4268_vm4, %v1265_v51 }
 0x6fb   :  { %2604 = vmatprep.mubr.msk.f32.mxu1 %vm4269_vm13, %v1262_v52  ;;  %vm1883_vm13 = vcmp.eq.s32.totalorder %v3163_v20, %v1874_v17 }
 0x7cb   :  { %v1340_v53 = vpop.f32.mrb[18].mxu0 }
 0x7cc   :  { %v2596_v55 = vpop.f32.mrb[19].mxu0  ;;  %2602 = vmatprep.subr.mxu1 %v1340_v53 }
 0x7cd   :  { %2603 = vmatpush3.msra.mxu1 %v1340_v53 }
 0x7ce   :  { %2605 = vmatmul.mubr.msk.f32.vlgmr.msra.gmra.mrb[8].mxu1 %vm4270_vm9, %v1263_v54  ;;  %2824 = vmatprep.subr.msk.bf16.mxu1 %vm3811_vm2, %v2937_v16  ;;  %vm1884_vm9 = vcmp.eq.s32.totalorder %v3174_v22, %v1874_v17 }
 0x7cf   :  { %2826 = vmatpush3.bf16.msk.msra.mxu1 %vm3811_vm2, %v2937_v16  ;;  %vm1595_vm2 = vcmask 130048  }
 0x7d0   :  { %2828 = vmatprep.subr.msk.bf16.mxu1 %vm3835_vm5, %v2937_v16  ;;  %2646 = vmatprep.mubr.msk.f32.mxu0 %vm1595_vm2, %v1270_v56 }
 0x7d3   :  { %2830 = vmatpush3.bf16.msk.msra.mxu1 %vm3835_vm5, %v2937_v16  ;;  %vm1875_vm5 = vcmp.eq.s32.totalorder %v3074_v3, %v1874_v17 }
 0x7d4   :  { %2832 = vmatprep.subr.msk.bf16.mxu1 %vm3843_vm12, %v2937_v16 }
 0x7d7   :  { %2834 = vmatpush3.bf16.msk.msra.mxu1 %vm3843_vm12, %v2937_v16  ;;  %vm1876_vm12 = vcmp.eq.s32.totalorder %v3084_v6, %v1874_v17 }
 0x7d8   :  { %2836 = vmatprep.subr.msk.bf16.mxu1 %vm3862_vm7, %v2937_v16 }
 0x7db   :  { %2838 = vmatpush3.bf16.msk.msra.mxu1 %vm3862_vm7, %v2937_v16  ;;  %vm1877_vm7 = vcmp.eq.s32.totalorder %v3093_v9, %v1874_v17 }
 0x7dc   :  { %2840 = vmatprep.subr.msk.bf16.mxu1 %vm3875_vm15, %v2937_v16 }
 0x7df   :  { %2842 = vmatpush3.bf16.msk.msra.mxu1 %vm3875_vm15, %v2937_v16  ;;  %vm1878_vm15 = vcmp.eq.s32.totalorder %v3096_v10, %v1874_v17  ;;  %v1269_v10 = vld [vmem:[%s4097_s18 + $0x8] sm:$0xff] }
 0x7e0   :  { %2844 = vmatprep.subr.msk.bf16.mxu1 %vm3891_vm8, %v2937_v16 }
 0x7e3   :  { %2846 = vmatpush3.bf16.msk.msra.mxu1 %vm3891_vm8, %v2937_v16  ;;  %vm2863_vm8 = vmpackc.low %vm1876_vm12, %vm1875_vm5  ;;  %vm4271_vm12 = vcmask 64512  }
 0x7e4   :  { %2848 = vmatprep.subr.msk.bf16.mxu1 %vm3907_vm14, %v2937_v16  ;;  %vm2879_vm5 = vmpackc.low %vm1884_vm9, %vm1883_vm13 }
 0x7e7   :  { %2850 = vmatpush3.bf16.msk.msra.mxu1 %vm3907_vm14, %v2937_v16  ;;  %vm2867_vm14 = vmpackc.low %vm1878_vm15, %vm1877_vm7  ;;  %vm1885_vm15 = vcmp.eq.s32.totalorder %v3196_v24, %v1874_v17 }
 0x7e8   :  { %2852 = vmatprep.subr.msk.bf16.mxu1 %vm3923_vm10, %v2937_v16  ;;  %vm4272_vm7 = vmmov %vm4271_vm12 }
 0x7eb   :  { %2854 = vmatpush3.bf16.msk.msra.mxu1 %vm3923_vm10, %v2937_v16  ;;  %vm1881_vm10 = vcmp.eq.s32.totalorder %v3130_v15, %v1874_v17 }
 0x7ec   :  { %2864 = vmatprep.subr.msk.bf16.mxu1 %vm2863_vm8, %v2937_v16  ;;  %vm2875_vm4 = vmpackc.low %vm1882_vm0, %vm1881_vm10  ;;  %vm1890_vm10 = vcmp.eq.s32.totalorder %v3285_v35, %v1874_v17 }
 0x8a1   :  { %v2606_v58 = vpop.f32.mrb[8].mxu1 }
 0x8a2   :  { %v1517_v60 = vadd.f32 %v2606_v58, %v1514_v57  ;;  %v1497_v61 = vpop.f32.mrb[9].mxu1 }
 0x8a3   :  { %v1516_v62 = vadd.f32 %v1509_v59, %v1497_v61 }
 0x8a4   :  { %v1519_v63 = vmax.f32 %v1517_v60, 0.0 }
 0x8a5   :  { %v1518_v0 = vmax.f32 %v1516_v62, 0.0 }
 0x8a7   :  { %v2855_v1 = vpack.c.bf16 %v1519_v63, %v1518_v0  ;;  %2639 = vmatprep.mubr.f32.mxu1 %v1518_v0 }
 0x8a8   :  { %2640 = vmatmul.mubr.f32.vlgmr.msra.gmra.mrb[10].mxu1 %v1519_v63 }
 0x8a9   :  { %2856 = vmatprep.subr.bf16.mxu0 %v2855_v1  ;;  %2866 = vmatpush3.bf16.msk.msra.mxu1 %vm2863_vm8, %v2937_v16  ;;  %vm1886_vm8 = vcmp.eq.s32.totalorder %v3207_v26, %v1874_v17 }
 0x8aa   :  { %2858 = vmatpush3.bf16.msra.mxu0 %v2855_v1  ;;  %2868 = vmatprep.subr.msk.bf16.mxu1 %vm2867_vm14, %v2937_v16 }
 0x8ad   :  { %2647 = vmatmul.mubr.msk.f32.vlgmr.msra.gmra.mrb[20].mxu0 %vm1595_vm2, %v1271_v7  ;;  %2870 = vmatpush3.bf16.msk.msra.mxu1 %vm2867_vm14, %v2937_v16  ;;  %vm2883_vm14 = vmpackc.low %vm1886_vm8, %vm1885_vm15 }
 0x8ae   :  { %2653 = vmatprep.mubr.msk.f32.mxu0 %vm1595_vm2, %v1268_v14  ;;  %2872 = vmatprep.subr.msk.bf16.mxu1 %vm2871_vm11, %v2937_v16 }
 0x8b1   :  { %2874 = vmatpush3.bf16.msk.msra.mxu1 %vm2871_vm11, %v2937_v16  ;;  %vm2887_vm11 = vmpackc.low %vm1888_vm6, %vm1887_vm1 }
 0x8b2   :  { %2876 = vmatprep.subr.msk.bf16.mxu1 %vm2875_vm4, %v2937_v16 }
 0x8b5   :  { %2878 = vmatpush3.bf16.msk.msra.mxu1 %vm2875_vm4, %v2937_v16  ;;  %vm2064_vm4 = vcmask 8192  }
 0x8b6   :  { %2880 = vmatprep.subr.msk.bf16.mxu1 %vm2879_vm5, %v2937_v16 }
 0x8b9   :  { %2882 = vmatpush3.bf16.msk.msra.mxu1 %vm2879_vm5, %v2937_v16 }
 0x8ba   :  { %2884 = vmatprep.subr.msk.bf16.mxu1 %vm2883_vm14, %v2937_v16 }
 0x8bd   :  { %2886 = vmatpush3.bf16.msk.msra.mxu1 %vm2883_vm14, %v2937_v16 }
 0x8be   :  { %2888 = vmatprep.subr.msk.bf16.mxu1 %vm2887_vm11, %v2937_v16 }
 0x8c1   :  { %2890 = vmatpush3.bf16.msk.msra.mxu1 %vm2887_vm11, %v2937_v16 }
 0x97b   :  { %v2641_v4 = vpop.f32.mrb[10].mxu1 }
 0x97c   :  { %v1586_v6 = vpop.f32.mrb[11].mxu1 }
 0x97d   :  { %v2859_v9 = vpack.c.bf16 %v2641_v4, %v1586_v6 }
 0x97f   :  { %2860 = vmatprep.subr.bf16.mxu0 %v2859_v9 }
 0x980   :  { %2862 = vmatpush3.bf16.msra.mxu0 %v2859_v9 }
 0x981   :  { %2656 = vmatprep.subr.mxu0 %v3935_v50 }
 0x983   :  { %2654 = vmatmul.mubr.msk.f32.vlgmr.msra.gmra.mrb[20].mxu0 %vm1595_vm2, %v1269_v10 }
 0x984   :  { %2657 = vmatpush3.msra.mxu0 %v3935_v50  ;;  %2658 = vmatprep.mubr.msk.f32.mxu0 %vm4271_vm12, %v1772_v11 }
 0x985   :  { %2895 = vmatprep.subr.bf16.mxu0 %v2934_v2  ;;  %v1766_v2 = vpop.permute.xlu0 %1765 }
 0x987   :  { %2659 = vmatmul.mubr.msk.f32.vlgmr.msra.gmra.mrb[22].mxu0 %vm4272_vm7, %v1773_v13 }
 0x988   :  { %2700 = vmatprep.mubr.msk.f32.mxu0 %vm4177_vm3, %v2936_v5  ;;  %vm1889_vm3 = vcmp.eq.s32.totalorder %v3278_v34, %v1874_v17  ;;  %v1761_v5 = vpop.permute.xlu1 %1760 }
 0x989   :  { %vm2891_vm0 = vmpackc.low %vm1890_vm10, %vm1889_vm3  ;;  %v1784_v24 = vpop.permute.xlu0 %1783 }
 0x98a   :  { %2892 = vmatprep.subr.msk.bf16.mxu1 %vm2891_vm0, %v2937_v16 }
 0x98b   :  { %2894 = vmatpush3.bf16.msk.msra.mxu1 %vm2891_vm0, %v2937_v16 }
 0x98c   :  { %v1779_v29 = vpop.permute.xlu1 %1778 }
 0x990   :  { %v1985_v37 = vpop.permute.xlu1 %1984 }
 0x991   :  { %v1990_v38 = vrot.slane %v1985_v37, %v1989_v36 }
 0xa56   :  { %v2655_v15 = vpop.f32.mrb[20].mxu0 }
 0xa57   :  { %v1769_v18 = vadd.f32 %v2655_v15, %v1766_v2  ;;  %v1749_v20 = vpop.f32.mrb[21].mxu0 }
 0xa58   :  { %v1768_v22 = vadd.f32 %v1761_v5, %v1749_v20 }
 0xa59   :  { %v1771_v31 = vmax.f32 %v1769_v18, 0.0 }
 0xa5a   :  { %v2660_v26 = vpop.f32.mrb[22].mxu0  ;;  %v1770_v34 = vmax.f32 %v1768_v22, 0.0 }
 0xa5b   :  { %v1864_v19 = vadd.f32 %v2660_v26, %v1784_v24  ;;  %v1858_v21 = vpop.f32.mrb[23].mxu0 }
 0xa5c   :  { %v1859_v23 = vadd.f32 %v1858_v21, %v1779_v29 }
 0xa5d   :  { %v1868_v35 = vadd.f32 %v1864_v19, %v1771_v31 }
 0xa5e   :  { %v1867_v25 = vadd.f32 %v1859_v23, %v1770_v34 }
 0xa5f   :  { %v1870_v28 = vmax.f32 %v1868_v35, 0.0 }
 0xa60   :  { %v1869_v27 = vmax.f32 %v1867_v25, 0.0 }
 0xa62   :  { %2693 = vmatprep.mubr.f32.mxu1 %v1869_v27 }
 0xa63   :  { %2694 = vmatmul.mubr.f32.vlgmr.msra.gmra.mrb[12].mxu1 %v1870_v28 }
 0xb36   :  { %v2695_v16 = vpop.f32.mrb[12].mxu1 }
 0xb37   :  { %v1973_v30 = vpop.f32.mrb[13].mxu1 }
 0xb38   :  { %v2896_v32 = vpack.c.bf16 %v2695_v16, %v1973_v30 }
 0xb3a   :  { %2897 = vmatpush3.bf16.msra.mxu0 %v2896_v32 }
 0xb3d   :  { %2701 = vmatmul.mubr.msk.f32.vlgmr.msra.gmra.mrb[24].mxu0 %vm1595_vm2, %v1871_v33 }
 0xc10   :  { %v2060_v39 = vpop.f32.mrb[24].mxu0 }
 0xc11   :  { %v2061_v40 = vadd.f32 %v2060_v39, %v1990_v38  ;;  %v2702_v41 = vpop.f32.mrb[25].mxu0 }
 0xc13   :  { %2065 = vst.msk [vmem:[#allocation3] sm:$0x1] %vm2064_vm4, %v2061_v40 }
 0xc14   :  { %2921 = shalt.err (!%p2918_p4)
}
 0xc15   :  { %s2922_s13 = scalar_lea.hbm %s4104_s25, 16 }
 0xc16   :  { %p2923_p5 = scmp.ne.s32.totalorder %s4104_s25, %s2922_s13  ;;  %p2926_p6 = scmp.lt.u32.totalorder %s2922_s13, %s4104_s25 }
 0xc18   :  { %p2928_p7 = pnand %p2926_p6, %p2923_p5 }
 0xc1a   :  { %2931 = shalt.err (!%p2928_p7)
}
 0xc1b   :  { %2075 = dma.vmem_to_hbm [thread:$0]  %s2073_s27, 16, %s4104_s25, [#allocation4]  }
 0xc1c   :  { %2932 = dma.done.wait [#allocation4], 16  }
 0xc1d   :  { %2933 = vsyncadd [#allocation4], 4294967280 }
 0xc1e   :  { %2079 = vsyncpa [#allocation4], 1 }

</bundles_post_ra>
